<compile_context>
chip_gen: v6e
topology: v6e:2x2x1
jax: 0.10.0
libtpu: 0.0.40
codegen_flags: <defaults>
</compile_context>

<pallas_src>
import math
import functools

import jax
import jax.numpy as jnp
import numpy as np
from jax import lax
from jax.experimental import pallas as pl
from jax.experimental.pallas import tpu as pltpu

F_X = 20      # einops f for x               ('b (c f) l -> (b f) c l', f=20)
F_COND = 4    # einops f for clearly_conditon (f=4)


def _gelu_tanh(x):
    c = math.sqrt(2.0 / math.pi)
    return 0.5 * x * (1.0 + jnp.tanh(c * (x + 0.044715 * x * x * x)))


# ----------------------------- fused Pallas kernel ---------------------------

def _fused_block_kernel(x_full_ref, x_tile_ref, ss_ref,
                        kc_ref, vc_ref,
                        wq_s_ref, bq_s_ref, wkv_s_ref, bkv_s_ref,
                        wap_ref, bap_ref,
                        wqx_ref, bqx_ref, wcp_ref, bcp_ref,
                        wfc1_ref, bfc1_ref, wfc2_ref, bfc2_ref,
                        o_ref, k_scr, v_scr,
                        *, num_heads, approx_recip):
    C = x_full_ref.shape[2]
    H = num_heads
    D = C // H
    scale = 1.0 / math.sqrt(D)
    nt = pl.program_id(1)

    def mm(a, w_ref, b_ref):
        # bf16 MXU matmul, f32 accumulation, f32 bias epilogue.
        return (jnp.dot(a.astype(jnp.bfloat16), w_ref[...],
                        preferred_element_type=jnp.float32) + b_ref[...])

    def ln_mod(z, shift, scale_):
        # LayerNorm (no affine, eps=1e-6) then t2i_modulate: y*(1+scale)+shift.
        mu = jnp.mean(z, axis=-1, keepdims=True)
        var = jnp.mean((z - mu) ** 2, axis=-1, keepdims=True)
        zn = (z - mu) * lax.rsqrt(var + 1e-6)
        return zn * (1.0 + scale_) + shift

    def softmax_rows(s):
        m = jnp.max(s, axis=-1, keepdims=True)
        p = jnp.exp(s - m)
        denom = jnp.sum(p, axis=-1, keepdims=True)
        # EUP reciprocal instead of a VALU divide.  Precision note: approx
        # reciprocal + bf16 probabilities are an intentional trade; set
        # approx_recip=False for a bit-exact-er softmax normalisation.
        return p * pl.reciprocal(denom, approx=approx_recip)

    def split_heads(a):           # (R, C) -> (H, R, D)
        return jnp.swapaxes(a.reshape(a.shape[0], H, D), 0, 1)

    def merge_heads(a):           # (H, R, D) -> (R, C)
        return jnp.swapaxes(a, 0, 1).reshape(a.shape[1], C)

    def attend(q, k, v):
        # q: (R, C) f32, already scaled by 1/sqrt(D); k, v: (H, S, D) bf16.
        # One batched dot_general per matmul (no per-head loop, no scratch
        # round trip); result merged back to (R, C) in registers.
        q3 = split_heads(q).astype(jnp.bfloat16)
        s = lax.dot_general(q3, k, (((2,), (2,)), ((0,), (0,))),
                            preferred_element_type=jnp.float32)        # (H,R,S)
        p = softmax_rows(s).astype(jnp.bfloat16)
        pv = lax.dot_general(p, v, (((2,), (1,)), ((0,), (0,))),
                             preferred_element_type=jnp.float32)       # (H,R,D)
        return merge_heads(pv)

    ss = ss_ref[0].astype(jnp.float32)                      # (6, C)
    shift_msa, scale_msa, gate_msa = ss[0:1], ss[1:2], ss[2:3]
    shift_mlp, scale_mlp, gate_mlp = ss[3:4], ss[4:5], ss[5:6]

    # Whole-sequence self-attention K/V, computed once per batch element and
    # cached head-major in VMEM for all query-row tiles of this batch.
    @pl.when(nt == 0)
    def _():
        xm_full = ln_mod(x_full_ref[0].astype(jnp.float32), shift_msa, scale_msa)
        kv = mm(xm_full, wkv_s_ref, bkv_s_ref)                         # (N, 2C)
        k_scr[...] = split_heads(kv[:, :C]).astype(jnp.bfloat16)
        v_scr[...] = split_heads(kv[:, C:]).astype(jnp.bfloat16)

    x = x_tile_ref[0].astype(jnp.float32)                              # (TQ, C)

    # ---- self-attention branch (WindowAttention, window_size=0) ----
    q = mm(ln_mod(x, shift_msa, scale_msa), wq_s_ref, bq_s_ref) * scale
    attn = attend(q, k_scr[...], v_scr[...])
    x = x + gate_msa * mm(attn, wap_ref, bap_ref)

    # ---- cross-attention branch (global over all flattened condition tokens)
    qc = mm(x, wqx_ref, bqx_ref) * scale
    cross = attend(qc, kc_ref[...], vc_ref[...])
    x = x + mm(cross, wcp_ref, bcp_ref)

    # ---- MLP branch ----
    h = _gelu_tanh(mm(ln_mod(x, shift_mlp, scale_mlp), wfc1_ref, bfc1_ref))
    o_ref[0] = (x + gate_mlp * mm(h, wfc2_ref, bfc2_ref)).astype(o_ref.dtype)


# ------------------------------ Pallas wrapper --------------------------------

def block_forward(params, x, t, cond, flow_y, num_heads, *, tq=None,
                  approx_recip=True):
    del flow_y  # accepted but unused, matching the reference module's forward
    B, N, C = x.shape
    M = cond.shape[1]
    H = num_heads
    D = C // H
    mlp_h = params["w_fc1"].shape[1]
    assert C % H == 0
    # module contract for the einops rearranges (they are permutation no-ops,
    # validated against the explicit reference below)
    assert N % F_X == 0 and M % F_COND == 0

    if tq is None:
        tq = N
    assert N % tq == 0 and (tq % 8 == 0 or tq == N)
    n_tiles = N // tq

    out_dtype = x.dtype          # preserve the caller's activation dtype
    Tk = B * M

    # adaLN-single modulation (tiny, per-batch).
    ss = (params["scale_shift_table"][None] + t.reshape(B, 6, C)).astype(jnp.float32)

    # Grid-invariant cross-attention K/V projection hoisted out of the kernel
    # (computed once, not B*n_tiles times) and laid out head-major.
    cond_flat = cond.reshape(Tk, C).astype(jnp.float32)
    kv = (cond_flat @ params["w_kv"].astype(jnp.float32)) + params["b_kv"]
    kv = kv.reshape(Tk, 2, H, D)
    kc = jnp.transpose(kv[:, 0], (1, 0, 2)).astype(jnp.bfloat16)   # (H, Tk, D)
    vc = jnp.transpose(kv[:, 1], (1, 0, 2)).astype(jnp.bfloat16)   # (H, Tk, D)

    # Split the fused qkv weight so the per-tile step only runs the q
    # projection; the (C, 2C) K/V projection runs once per batch element.
    w_q_s, b_q_s = params["w_qkv"][:, :C], params["b_qkv"][:C]
    w_kv_s, b_kv_s = params["w_qkv"][:, C:], params["b_qkv"][C:]

    wcast = lambda w: w.astype(jnp.bfloat16)
    bcast = lambda b: b.reshape(1, -1).astype(jnp.float32)

    def full(shape):
        rank = len(shape)
        return pl.BlockSpec(shape, lambda b, n: (0,) * rank)

    kern = functools.partial(_fused_block_kernel, num_heads=H,
                             approx_recip=approx_recip)
    return pl.pallas_call(
        kern,
        grid=(B, n_tiles),
        in_specs=[
            pl.BlockSpec((1, N, C), lambda b, n: (b, 0, 0)),   # x, full (resident/b)
            pl.BlockSpec((1, tq, C), lambda b, n: (b, n, 0)),  # x, query-row tile
            pl.BlockSpec((1, 6, C), lambda b, n: (b, 0, 0)),   # scale/shift/gate
            full((H, Tk, D)), full((H, Tk, D)),                # cross K / V (hoisted)
            full((C, C)), full((1, C)),                        # self q proj
            full((C, 2 * C)), full((1, 2 * C)),                # self kv proj
            full((C, C)), full((1, C)),                        # attn out proj
            full((C, C)), full((1, C)),                        # cross q proj
            full((C, C)), full((1, C)),                        # cross out proj
            full((C, mlp_h)), full((1, mlp_h)),                # fc1
            full((mlp_h, C)), full((1, C)),                    # fc2
        ],
        out_specs=pl.BlockSpec((1, tq, C), lambda b, n: (b, n, 0)),
        out_shape=jax.ShapeDtypeStruct((B, N, C), out_dtype),
        scratch_shapes=[pltpu.VMEM((H, N, D), jnp.bfloat16),   # self-attn K
                        pltpu.VMEM((H, N, D), jnp.bfloat16)],  # self-attn V
        compiler_params=pltpu.CompilerParams(
            dimension_semantics=("parallel", "arbitrary"),
            vmem_limit_bytes=48 * 1024 * 1024),
    )(x, x, ss, kc, vc,
      wcast(w_q_s), bcast(b_q_s),
      wcast(w_kv_s), bcast(b_kv_s),
      wcast(params["w_attn_proj"]), bcast(params["b_attn_proj"]),
      wcast(params["w_q"]), bcast(params["b_q"]),
      wcast(params["w_cross_proj"]), bcast(params["b_cross_proj"]),
      wcast(params["w_fc1"]), bcast(params["b_fc1"]),
      wcast(params["w_fc2"]), bcast(params["b_fc2"]))


# --------------------------- pure-JAX reference ------------------------------
# Keeps the einops rearranges explicitly (unlike the kernel) so the skipped
# permutations are validated numerically.

def ref_forward(params, x, t, cond, flow_y, num_heads):
    del flow_y
    B, N, C = x.shape
    H = num_heads
    D = C // H

    def ln_mod(z, shift, scale):
        mean = jnp.mean(z, -1, keepdims=True)
        var = jnp.mean((z - mean) ** 2, -1, keepdims=True)
        zn = (z - mean) / jnp.sqrt(var + 1e-6)
        return zn * (1.0 + scale) + shift

    def attn(q, k, v):
        s = jnp.einsum("bhqd,bhkd->bhqk", q, k) / math.sqrt(D)
        p = jax.nn.softmax(s, axis=-1)
        return jnp.einsum("bhqk,bhkd->bhqd", p, v)

    ss = params["scale_shift_table"][None] + t.reshape(B, 6, C)
    sh_msa, sc_msa, g_msa, sh_mlp, sc_mlp, g_mlp = (ss[:, i:i + 1]
                                                    for i in range(6))

    xm = ln_mod(x, sh_msa, sc_msa)
    qkv = (xm.reshape(B * N, C) @ params["w_qkv"]
           + params["b_qkv"]).reshape(B, N, 3, H, D)
    q, k, v = (jnp.transpose(qkv[:, :, i], (0, 2, 1, 3)) for i in range(3))
    a = attn(q, k, v)
    a = jnp.transpose(a, (0, 2, 1, 3)).reshape(B * N, C)
    a = a @ params["w_attn_proj"] + params["b_attn_proj"]
    x = x + g_msa * a.reshape(B, N, C)

    Nc = N // F_X
    xr = x.reshape(B, Nc, F_X, C).transpose(0, 2, 1, 3).reshape(B * F_X, Nc, C)
    M = cond.shape[1]
    Mc = M // F_COND
    cr = cond.reshape(B, Mc, F_COND, C).transpose(0, 2, 1, 3).reshape(
        B * F_COND, Mc, C)
    Tq = B * F_X * Nc
    Tk = B * F_COND * Mc
    qc = (xr.reshape(Tq, C) @ params["w_q"] + params["b_q"]).reshape(Tq, H, D)
    kv = (cr.reshape(Tk, C) @ params["w_kv"] + params["b_kv"]).reshape(Tk, 2, H, D)
    qc = jnp.transpose(qc, (1, 0, 2))[None]
    kc = jnp.transpose(kv[:, 0], (1, 0, 2))[None]
    vc = jnp.transpose(kv[:, 1], (1, 0, 2))[None]
    ca = attn(qc, kc, vc)[0]
    ca = jnp.transpose(ca, (1, 0, 2)).reshape(Tq, C)
    ca = ca @ params["w_cross_proj"] + params["b_cross_proj"]
    xr = xr + ca.reshape(B * F_X, Nc, C)
    x = xr.reshape(B, F_X, Nc, C).transpose(0, 2, 1, 3).reshape(B, N, C)

    xm2 = ln_mod(x, sh_mlp, sc_mlp)
    h = xm2.reshape(B * N, C) @ params["w_fc1"] + params["b_fc1"]
    h = jax.nn.gelu(h, approximate=True)
    y = h @ params["w_fc2"] + params["b_fc2"]
    x = x + g_mlp * y.reshape(B, N, C)
    return x


# ---------------------------------- main -------------------------------------

if __name__ == "__main__":
    B = 2
    C = 32                    # hidden_size
    H = 4                     # num_heads (head_dim = 8)
    N = 40                    # sequence length, divisible by f=20
    M = 8                     # condition sequence length, divisible by f=4
    MLP_HIDDEN = int(C * 4.0)

    key = jax.random.PRNGKey(0)
    ks = jax.random.split(key, 16)

    params = {
        "scale_shift_table": jax.random.normal(ks[0], (6, C), jnp.float32)
                             / math.sqrt(C),
        "w_qkv":        jax.random.normal(ks[1],  (C, 3 * C), jnp.float32) * 0.02,
        "b_qkv":        jax.random.normal(ks[2],  (3 * C,),   jnp.float32) * 0.02,
        "w_attn_proj":  jax.random.normal(ks[3],  (C, C),     jnp.float32) * 0.02,
        "b_attn_proj":  jax.random.normal(ks[4],  (C,),       jnp.float32) * 0.02,
        "w_q":          jax.random.normal(ks[5],  (C, C),     jnp.float32) * 0.02,
        "b_q":          jax.random.normal(ks[6],  (C,),       jnp.float32) * 0.02,
        "w_kv":         jax.random.normal(ks[7],  (C, 2 * C), jnp.float32) * 0.02,
        "b_kv":         jax.random.normal(ks[8],  (2 * C,),   jnp.float32) * 0.02,
        "w_cross_proj": jax.random.normal(ks[9],  (C, C),     jnp.float32) * 0.02,
        "b_cross_proj": jax.random.normal(ks[10], (C,),       jnp.float32) * 0.02,
        "w_fc1":        jax.random.normal(ks[11], (C, MLP_HIDDEN), jnp.float32) * 0.02,
        "b_fc1":        jax.random.normal(ks[12], (MLP_HIDDEN,),   jnp.float32) * 0.02,
        "w_fc2":        jax.random.normal(ks[13], (MLP_HIDDEN, C), jnp.float32) * 0.02,
        "b_fc2":        jax.random.normal(ks[14], (C,),            jnp.float32) * 0.02,
    }

    dk = jax.random.split(ks[15], 4)
    x = jax.random.normal(dk[0], (B, N, C), jnp.float32)
    t = jax.random.normal(dk[1], (B, 6 * C), jnp.float32)
    clearly_conditon = jax.random.normal(dk[2], (B, M, C), jnp.float32)
    flow_y = jax.random.normal(dk[3], (B, M, C), jnp.float32)  # unused by forward

    # tq=8 -> 5 query-row tiles per batch element: exercises the tiled grid and
    # the once-per-batch K/V caching path even at toy sizes.
    fwd = jax.jit(functools.partial(block_forward, num_heads=H, tq=8))
    out = fwd(params, x, t, clearly_conditon, flow_y)
    out = jax.block_until_ready(out)

    # High-precision pure-JAX reference (kernel uses bf16 MXU inputs + f32 acc).
    with jax.default_matmul_precision("highest"):
        ref = ref_forward(params, x, t, clearly_conditon, flow_y, num_heads=H)

    np.testing.assert_allclose(np.asarray(out), np.asarray(ref),
                               rtol=2e-2, atol=2e-2)
    print("KERNEL_OK")
</pallas_src>

<mosaic_0001>
module attributes {stable_mosaic.version = 11 : i64} {
  func.func @_fused_block_kernel(%arg0: i32, %arg1: i32, %arg2: memref<1x40x32xf32, #tpu.memory_space<vmem>>, %arg3: memref<1x8x32xf32, #tpu.memory_space<vmem>>, %arg4: memref<1x6x32xf32, #tpu.memory_space<vmem>>, %arg5: memref<4x16x8xbf16, #tpu.memory_space<vmem>>, %arg6: memref<4x16x8xbf16, #tpu.memory_space<vmem>>, %arg7: memref<32x32xbf16, #tpu.memory_space<vmem>>, %arg8: memref<1x32xf32, #tpu.memory_space<vmem>>, %arg9: memref<32x64xbf16, #tpu.memory_space<vmem>>, %arg10: memref<1x64xf32, #tpu.memory_space<vmem>>, %arg11: memref<32x32xbf16, #tpu.memory_space<vmem>>, %arg12: memref<1x32xf32, #tpu.memory_space<vmem>>, %arg13: memref<32x32xbf16, #tpu.memory_space<vmem>>, %arg14: memref<1x32xf32, #tpu.memory_space<vmem>>, %arg15: memref<32x32xbf16, #tpu.memory_space<vmem>>, %arg16: memref<1x32xf32, #tpu.memory_space<vmem>>, %arg17: memref<32x128xbf16, #tpu.memory_space<vmem>>, %arg18: memref<1x128xf32, #tpu.memory_space<vmem>>, %arg19: memref<128x32xbf16, #tpu.memory_space<vmem>>, %arg20: memref<1x32xf32, #tpu.memory_space<vmem>>, %arg21: memref<1x8x32xf32, #tpu.memory_space<vmem>>, %arg22: memref<4x40x8xbf16, #tpu.memory_space<vmem>>, %arg23: memref<4x40x8xbf16, #tpu.memory_space<vmem>>) attributes {dimension_semantics = [#tpu.dimension_semantics<parallel>, #tpu.dimension_semantics<arbitrary>], iteration_bounds = array<i64: 2, 5>, scalar_prefetch = 0 : i64, scratch_operands = 2 : i64, tpu.core_type = #tpu.core_type<tc>, window_params = [{transform_indices = @transform_0, window_bounds = array<i64: 1, 40, 32>}, {transform_indices = @transform_1, window_bounds = array<i64: 1, 8, 32>}, {transform_indices = @transform_2, window_bounds = array<i64: 1, 6, 32>}, {pipeline_mode = #tpu.pipeline_mode<synchronous>, transform_indices = @transform_3, window_bounds = array<i64: 4, 16, 8>}, {pipeline_mode = #tpu.pipeline_mode<synchronous>, transform_indices = @transform_4, window_bounds = array<i64: 4, 16, 8>}, {pipeline_mode = #tpu.pipeline_mode<synchronous>, transform_indices = @transform_5, window_bounds = array<i64: 32, 32>}, {pipeline_mode = #tpu.pipeline_mode<synchronous>, transform_indices = @transform_6, window_bounds = array<i64: 1, 32>}, {pipeline_mode = #tpu.pipeline_mode<synchronous>, transform_indices = @transform_7, window_bounds = array<i64: 32, 64>}, {pipeline_mode = #tpu.pipeline_mode<synchronous>, transform_indices = @transform_8, window_bounds = array<i64: 1, 64>}, {pipeline_mode = #tpu.pipeline_mode<synchronous>, transform_indices = @transform_9, window_bounds = array<i64: 32, 32>}, {pipeline_mode = #tpu.pipeline_mode<synchronous>, transform_indices = @transform_10, window_bounds = array<i64: 1, 32>}, {pipeline_mode = #tpu.pipeline_mode<synchronous>, transform_indices = @transform_11, window_bounds = array<i64: 32, 32>}, {pipeline_mode = #tpu.pipeline_mode<synchronous>, transform_indices = @transform_12, window_bounds = array<i64: 1, 32>}, {pipeline_mode = #tpu.pipeline_mode<synchronous>, transform_indices = @transform_13, window_bounds = array<i64: 32, 32>}, {pipeline_mode = #tpu.pipeline_mode<synchronous>, transform_indices = @transform_14, window_bounds = array<i64: 1, 32>}, {pipeline_mode = #tpu.pipeline_mode<synchronous>, transform_indices = @transform_15, window_bounds = array<i64: 32, 128>}, {pipeline_mode = #tpu.pipeline_mode<synchronous>, transform_indices = @transform_16, window_bounds = array<i64: 1, 128>}, {pipeline_mode = #tpu.pipeline_mode<synchronous>, transform_indices = @transform_17, window_bounds = array<i64: 128, 32>}, {pipeline_mode = #tpu.pipeline_mode<synchronous>, transform_indices = @transform_18, window_bounds = array<i64: 1, 32>}, {transform_indices = @transform_19, window_bounds = array<i64: 1, 8, 32>}]} {
    %c0 = arith.constant 0 : index
    %c0_0 = arith.constant 0 : index
    %c0_1 = arith.constant 0 : index
    %0 = vector.load %arg4[%c0, %c0_0, %c0_1] : memref<1x6x32xf32, #tpu.memory_space<vmem>>, vector<1x6x32xf32>
    %1 = vector.shape_cast %0 : vector<1x6x32xf32> to vector<6x32xf32>
    %2 = vector.extract_strided_slice %1 {offsets = [0, 0], sizes = [1, 32], strides = [1, 1]} : vector<6x32xf32> to vector<1x32xf32>
    %3 = vector.extract_strided_slice %1 {offsets = [1, 0], sizes = [1, 32], strides = [1, 1]} : vector<6x32xf32> to vector<1x32xf32>
    %4 = vector.extract_strided_slice %1 {offsets = [2, 0], sizes = [1, 32], strides = [1, 1]} : vector<6x32xf32> to vector<1x32xf32>
    %5 = vector.extract_strided_slice %1 {offsets = [3, 0], sizes = [1, 32], strides = [1, 1]} : vector<6x32xf32> to vector<1x32xf32>
    %6 = vector.extract_strided_slice %1 {offsets = [4, 0], sizes = [1, 32], strides = [1, 1]} : vector<6x32xf32> to vector<1x32xf32>
    %7 = vector.extract_strided_slice %1 {offsets = [5, 0], sizes = [1, 32], strides = [1, 1]} : vector<6x32xf32> to vector<1x32xf32>
    %c0_i32 = arith.constant 0 : i32
    %8 = arith.cmpi eq, %arg1, %c0_i32 : i32
    %9 = arith.extui %8 : i1 to i32
    %c0_i32_2 = arith.constant 0 : i32
    %10 = arith.cmpi ne, %9, %c0_i32_2 : i32
    scf.if %10 {
      %c0_76 = arith.constant 0 : index
      %c0_77 = arith.constant 0 : index
      %c0_78 = arith.constant 0 : index
      %164 = vector.load %arg2[%c0_76, %c0_77, %c0_78] : memref<1x40x32xf32, #tpu.memory_space<vmem>>, vector<1x40x32xf32>
      %165 = vector.shape_cast %164 : vector<1x40x32xf32> to vector<40x32xf32>
      %cst_79 = arith.constant dense<0.000000e+00> : vector<40xf32>
      %166 = vector.multi_reduction <add>, %165, %cst_79 [1] : vector<40x32xf32> to vector<40xf32>
      %167 = vector.shape_cast %166 : vector<40xf32> to vector<40x1xf32>
      %cst_80 = arith.constant 3.200000e+01 : f32
      %168 = vector.broadcast %cst_80 : f32 to vector<40x1xf32>
      %169 = arith.divf %167, %168 : vector<40x1xf32>
      %170 = vector.broadcast %169 : vector<40x1xf32> to vector<40x32xf32>
      %171 = arith.subf %165, %170 : vector<40x32xf32>
      %172 = arith.mulf %171, %171 : vector<40x32xf32>
      %cst_81 = arith.constant dense<0.000000e+00> : vector<40xf32>
      %173 = vector.multi_reduction <add>, %172, %cst_81 [1] : vector<40x32xf32> to vector<40xf32>
      %174 = vector.shape_cast %173 : vector<40xf32> to vector<40x1xf32>
      %cst_82 = arith.constant 3.200000e+01 : f32
      %175 = vector.broadcast %cst_82 : f32 to vector<40x1xf32>
      %176 = arith.divf %174, %175 : vector<40x1xf32>
      %177 = vector.broadcast %169 : vector<40x1xf32> to vector<40x32xf32>
      %178 = arith.subf %165, %177 : vector<40x32xf32>
      %cst_83 = arith.constant 9.99999997E-7 : f32
      %179 = vector.broadcast %cst_83 : f32 to vector<40x1xf32>
      %180 = arith.addf %176, %179 : vector<40x1xf32>
      %181 = math.rsqrt %180 : vector<40x1xf32>
      %182 = vector.broadcast %181 : vector<40x1xf32> to vector<40x32xf32>
      %183 = arith.mulf %178, %182 : vector<40x32xf32>
      %cst_84 = arith.constant 1.000000e+00 : f32
      %184 = vector.broadcast %cst_84 : f32 to vector<1x32xf32>
      %185 = arith.addf %184, %3 : vector<1x32xf32>
      %186 = vector.broadcast %185 : vector<1x32xf32> to vector<40x32xf32>
      %187 = arith.mulf %183, %186 : vector<40x32xf32>
      %188 = vector.broadcast %2 : vector<1x32xf32> to vector<40x32xf32>
      %189 = arith.addf %187, %188 : vector<40x32xf32>
      %190 = arith.truncf %189 : vector<40x32xf32> to vector<40x32xbf16>
      %c0_85 = arith.constant 0 : index
      %c0_86 = arith.constant 0 : index
      %191 = vector.load %arg9[%c0_85, %c0_86] : memref<32x64xbf16, #tpu.memory_space<vmem>>, vector<32x64xbf16>
      %cst_87 = arith.constant dense<0.000000e+00> : vector<40x64xf32>
      %192 = tpu.matmul %190, %191, %cst_87 {dimension_numbers = #tpu.dot_dimension_numbers<[1], [0], [0], [1], [0, 0, 1, 1], [], []>} : vector<40x32xbf16>, vector<32x64xbf16>, vector<40x64xf32> -> vector<40x64xf32>
      %c0_88 = arith.constant 0 : index
      %c0_89 = arith.constant 0 : index
      %193 = vector.load %arg10[%c0_88, %c0_89] : memref<1x64xf32, #tpu.memory_space<vmem>>, vector<1x64xf32>
      %194 = vector.broadcast %193 : vector<1x64xf32> to vector<40x64xf32>
      %195 = arith.addf %192, %194 : vector<40x64xf32>
      %196 = vector.extract_strided_slice %195 {offsets = [0, 0], sizes = [40, 32], strides = [1, 1]} : vector<40x64xf32> to vector<40x32xf32>
      %197 = vector.shape_cast %196 : vector<40x32xf32> to vector<40x4x8xf32>
      %198 = tpu.transpose %197, [1, 0, 2] : vector<40x4x8xf32> -> vector<4x40x8xf32>
      %199 = arith.truncf %198 : vector<4x40x8xf32> to vector<4x40x8xbf16>
      %c0_90 = arith.constant 0 : index
      %c0_91 = arith.constant 0 : index
      %c0_92 = arith.constant 0 : index
      %200 = vector.load %arg22[%c0_90, %c0_91, %c0_92] : memref<4x40x8xbf16, #tpu.memory_space<vmem>>, vector<4x40x8xbf16>
      tpu.vector_store %arg22[%c0_90, %c0_91, %c0_92], %199 {strides = array<i32>} : memref<4x40x8xbf16, #tpu.memory_space<vmem>>, vector<4x40x8xbf16>,
      %201 = vector.extract_strided_slice %195 {offsets = [0, 32], sizes = [40, 32], strides = [1, 1]} : vector<40x64xf32> to vector<40x32xf32>
      %202 = vector.shape_cast %201 : vector<40x32xf32> to vector<40x4x8xf32>
      %203 = tpu.transpose %202, [1, 0, 2] : vector<40x4x8xf32> -> vector<4x40x8xf32>
      %204 = arith.truncf %203 : vector<4x40x8xf32> to vector<4x40x8xbf16>
      %c0_93 = arith.constant 0 : index
      %c0_94 = arith.constant 0 : index
      %c0_95 = arith.constant 0 : index
      %205 = vector.load %arg23[%c0_93, %c0_94, %c0_95] : memref<4x40x8xbf16, #tpu.memory_space<vmem>>, vector<4x40x8xbf16>
      tpu.vector_store %arg23[%c0_93, %c0_94, %c0_95], %204 {strides = array<i32>} : memref<4x40x8xbf16, #tpu.memory_space<vmem>>, vector<4x40x8xbf16>,
    } else {
    }
    %c0_3 = arith.constant 0 : index
    %c0_4 = arith.constant 0 : index
    %c0_5 = arith.constant 0 : index
    %11 = vector.load %arg3[%c0_3, %c0_4, %c0_5] : memref<1x8x32xf32, #tpu.memory_space<vmem>>, vector<1x8x32xf32>
    %12 = vector.shape_cast %11 : vector<1x8x32xf32> to vector<8x32xf32>
    %cst = arith.constant dense<0.000000e+00> : vector<8xf32>
    %13 = vector.multi_reduction <add>, %12, %cst [1] : vector<8x32xf32> to vector<8xf32>
    %14 = vector.shape_cast %13 : vector<8xf32> to vector<8x1xf32>
    %cst_6 = arith.constant 3.200000e+01 : f32
    %15 = vector.broadcast %cst_6 : f32 to vector<8x1xf32>
    %16 = arith.divf %14, %15 : vector<8x1xf32>
    %17 = vector.broadcast %16 : vector<8x1xf32> to vector<8x32xf32>
    %18 = arith.subf %12, %17 : vector<8x32xf32>
    %19 = arith.mulf %18, %18 : vector<8x32xf32>
    %cst_7 = arith.constant dense<0.000000e+00> : vector<8xf32>
    %20 = vector.multi_reduction <add>, %19, %cst_7 [1] : vector<8x32xf32> to vector<8xf32>
    %21 = vector.shape_cast %20 : vector<8xf32> to vector<8x1xf32>
    %cst_8 = arith.constant 3.200000e+01 : f32
    %22 = vector.broadcast %cst_8 : f32 to vector<8x1xf32>
    %23 = arith.divf %21, %22 : vector<8x1xf32>
    %24 = vector.broadcast %16 : vector<8x1xf32> to vector<8x32xf32>
    %25 = arith.subf %12, %24 : vector<8x32xf32>
    %cst_9 = arith.constant 9.99999997E-7 : f32
    %26 = vector.broadcast %cst_9 : f32 to vector<8x1xf32>
    %27 = arith.addf %23, %26 : vector<8x1xf32>
    %28 = math.rsqrt %27 : vector<8x1xf32>
    %29 = vector.broadcast %28 : vector<8x1xf32> to vector<8x32xf32>
    %30 = arith.mulf %25, %29 : vector<8x32xf32>
    %cst_10 = arith.constant 1.000000e+00 : f32
    %31 = vector.broadcast %cst_10 : f32 to vector<1x32xf32>
    %32 = arith.addf %31, %3 : vector<1x32xf32>
    %33 = vector.broadcast %32 : vector<1x32xf32> to vector<8x32xf32>
    %34 = arith.mulf %30, %33 : vector<8x32xf32>
    %35 = vector.broadcast %2 : vector<1x32xf32> to vector<8x32xf32>
    %36 = arith.addf %34, %35 : vector<8x32xf32>
    %37 = arith.truncf %36 : vector<8x32xf32> to vector<8x32xbf16>
    %c0_11 = arith.constant 0 : index
    %c0_12 = arith.constant 0 : index
    %38 = vector.load %arg7[%c0_11, %c0_12] : memref<32x32xbf16, #tpu.memory_space<vmem>>, vector<32x32xbf16>
    %cst_13 = arith.constant dense<0.000000e+00> : vector<8x32xf32>
    %39 = tpu.matmul %37, %38, %cst_13 {dimension_numbers = #tpu.dot_dimension_numbers<[1], [0], [0], [1], [0, 0, 1, 1], [], []>} : vector<8x32xbf16>, vector<32x32xbf16>, vector<8x32xf32> -> vector<8x32xf32>
    %c0_14 = arith.constant 0 : index
    %c0_15 = arith.constant 0 : index
    %40 = vector.load %arg8[%c0_14, %c0_15] : memref<1x32xf32, #tpu.memory_space<vmem>>, vector<1x32xf32>
    %41 = vector.broadcast %40 : vector<1x32xf32> to vector<8x32xf32>
    %42 = arith.addf %39, %41 : vector<8x32xf32>
    %cst_16 = arith.constant 0.353553385 : f32
    %43 = vector.broadcast %cst_16 : f32 to vector<8x32xf32>
    %44 = arith.mulf %42, %43 : vector<8x32xf32>
    %c0_17 = arith.constant 0 : index
    %c0_18 = arith.constant 0 : index
    %c0_19 = arith.constant 0 : index
    %45 = vector.load %arg22[%c0_17, %c0_18, %c0_19] : memref<4x40x8xbf16, #tpu.memory_space<vmem>>, vector<4x40x8xbf16>
    %c0_20 = arith.constant 0 : index
    %c0_21 = arith.constant 0 : index
    %c0_22 = arith.constant 0 : index
    %46 = vector.load %arg23[%c0_20, %c0_21, %c0_22] : memref<4x40x8xbf16, #tpu.memory_space<vmem>>, vector<4x40x8xbf16>
    %47 = vector.shape_cast %44 : vector<8x32xf32> to vector<8x4x8xf32>
    %48 = tpu.transpose %47, [1, 0, 2] : vector<8x4x8xf32> -> vector<4x8x8xf32>
    %49 = arith.truncf %48 : vector<4x8x8xf32> to vector<4x8x8xbf16>
    %cst_23 = arith.constant dense<0.000000e+00> : vector<4x8x40xf32>
    %50 = tpu.matmul %49, %45, %cst_23 {dimension_numbers = #tpu.dot_dimension_numbers<[2], [2], [1], [1], [0, 0, 0, 1, 1, 1], [0], [0]>} : vector<4x8x8xbf16>, vector<4x40x8xbf16>, vector<4x8x40xf32> -> vector<4x8x40xf32>
    %cst_24 = arith.constant dense<0xFF800000> : vector<4x8xf32>
    %51 = vector.multi_reduction <maximumf>, %50, %cst_24 [2] : vector<4x8x40xf32> to vector<4x8xf32>
    %52 = vector.shape_cast %51 : vector<4x8xf32> to vector<4x8x1xf32>
    %53 = vector.broadcast %52 : vector<4x8x1xf32> to vector<4x8x40xf32>
    %54 = arith.subf %50, %53 : vector<4x8x40xf32>
    %55 = math.exp %54 : vector<4x8x40xf32>
    %cst_25 = arith.constant dense<0.000000e+00> : vector<4x8xf32>
    %56 = vector.multi_reduction <add>, %55, %cst_25 [2] : vector<4x8x40xf32> to vector<4x8xf32>
    %57 = vector.shape_cast %56 : vector<4x8xf32> to vector<4x8x1xf32>
    %58 = tpu.reciprocal %57 {approx = true} : vector<4x8x1xf32> -> vector<4x8x1xf32>
    %59 = vector.broadcast %58 : vector<4x8x1xf32> to vector<4x8x40xf32>
    %60 = arith.mulf %55, %59 : vector<4x8x40xf32>
    %61 = arith.truncf %60 : vector<4x8x40xf32> to vector<4x8x40xbf16>
    %cst_26 = arith.constant dense<0.000000e+00> : vector<4x8x8xf32>
    %62 = tpu.matmul %61, %46, %cst_26 {dimension_numbers = #tpu.dot_dimension_numbers<[2], [1], [1], [2], [0, 0, 0, 1, 1, 2], [0], [0]>} : vector<4x8x40xbf16>, vector<4x40x8xbf16>, vector<4x8x8xf32> -> vector<4x8x8xf32>
    %63 = tpu.transpose %62, [1, 0, 2] : vector<4x8x8xf32> -> vector<8x4x8xf32>
    %64 = vector.shape_cast %63 : vector<8x4x8xf32> to vector<8x32xf32>
    %65 = arith.truncf %64 : vector<8x32xf32> to vector<8x32xbf16>
    %c0_27 = arith.constant 0 : index
    %c0_28 = arith.constant 0 : index
    %66 = vector.load %arg11[%c0_27, %c0_28] : memref<32x32xbf16, #tpu.memory_space<vmem>>, vector<32x32xbf16>
    %cst_29 = arith.constant dense<0.000000e+00> : vector<8x32xf32>
    %67 = tpu.matmul %65, %66, %cst_29 {dimension_numbers = #tpu.dot_dimension_numbers<[1], [0], [0], [1], [0, 0, 1, 1], [], []>} : vector<8x32xbf16>, vector<32x32xbf16>, vector<8x32xf32> -> vector<8x32xf32>
    %c0_30 = arith.constant 0 : index
    %c0_31 = arith.constant 0 : index
    %68 = vector.load %arg12[%c0_30, %c0_31] : memref<1x32xf32, #tpu.memory_space<vmem>>, vector<1x32xf32>
    %69 = vector.broadcast %68 : vector<1x32xf32> to vector<8x32xf32>
    %70 = arith.addf %67, %69 : vector<8x32xf32>
    %71 = vector.broadcast %4 : vector<1x32xf32> to vector<8x32xf32>
    %72 = arith.mulf %71, %70 : vector<8x32xf32>
    %73 = arith.addf %12, %72 : vector<8x32xf32>
    %74 = arith.truncf %73 : vector<8x32xf32> to vector<8x32xbf16>
    %c0_32 = arith.constant 0 : index
    %c0_33 = arith.constant 0 : index
    %75 = vector.load %arg13[%c0_32, %c0_33] : memref<32x32xbf16, #tpu.memory_space<vmem>>, vector<32x32xbf16>
    %cst_34 = arith.constant dense<0.000000e+00> : vector<8x32xf32>
    %76 = tpu.matmul %74, %75, %cst_34 {dimension_numbers = #tpu.dot_dimension_numbers<[1], [0], [0], [1], [0, 0, 1, 1], [], []>} : vector<8x32xbf16>, vector<32x32xbf16>, vector<8x32xf32> -> vector<8x32xf32>
    %c0_35 = arith.constant 0 : index
    %c0_36 = arith.constant 0 : index
    %77 = vector.load %arg14[%c0_35, %c0_36] : memref<1x32xf32, #tpu.memory_space<vmem>>, vector<1x32xf32>
    %78 = vector.broadcast %77 : vector<1x32xf32> to vector<8x32xf32>
    %79 = arith.addf %76, %78 : vector<8x32xf32>
    %cst_37 = arith.constant 0.353553385 : f32
    %80 = vector.broadcast %cst_37 : f32 to vector<8x32xf32>
    %81 = arith.mulf %79, %80 : vector<8x32xf32>
    %c0_38 = arith.constant 0 : index
    %c0_39 = arith.constant 0 : index
    %c0_40 = arith.constant 0 : index
    %82 = vector.load %arg5[%c0_38, %c0_39, %c0_40] : memref<4x16x8xbf16, #tpu.memory_space<vmem>>, vector<4x16x8xbf16>
    %c0_41 = arith.constant 0 : index
    %c0_42 = arith.constant 0 : index
    %c0_43 = arith.constant 0 : index
    %83 = vector.load %arg6[%c0_41, %c0_42, %c0_43] : memref<4x16x8xbf16, #tpu.memory_space<vmem>>, vector<4x16x8xbf16>
    %84 = vector.shape_cast %81 : vector<8x32xf32> to vector<8x4x8xf32>
    %85 = tpu.transpose %84, [1, 0, 2] : vector<8x4x8xf32> -> vector<4x8x8xf32>
    %86 = arith.truncf %85 : vector<4x8x8xf32> to vector<4x8x8xbf16>
    %cst_44 = arith.constant dense<0.000000e+00> : vector<4x8x16xf32>
    %87 = tpu.matmul %86, %82, %cst_44 {dimension_numbers = #tpu.dot_dimension_numbers<[2], [2], [1], [1], [0, 0, 0, 1, 1, 1], [0], [0]>} : vector<4x8x8xbf16>, vector<4x16x8xbf16>, vector<4x8x16xf32> -> vector<4x8x16xf32>
    %cst_45 = arith.constant dense<0xFF800000> : vector<4x8xf32>
    %88 = vector.multi_reduction <maximumf>, %87, %cst_45 [2] : vector<4x8x16xf32> to vector<4x8xf32>
    %89 = vector.shape_cast %88 : vector<4x8xf32> to vector<4x8x1xf32>
    %90 = vector.broadcast %89 : vector<4x8x1xf32> to vector<4x8x16xf32>
    %91 = arith.subf %87, %90 : vector<4x8x16xf32>
    %92 = math.exp %91 : vector<4x8x16xf32>
    %cst_46 = arith.constant dense<0.000000e+00> : vector<4x8xf32>
    %93 = vector.multi_reduction <add>, %92, %cst_46 [2] : vector<4x8x16xf32> to vector<4x8xf32>
    %94 = vector.shape_cast %93 : vector<4x8xf32> to vector<4x8x1xf32>
    %95 = tpu.reciprocal %94 {approx = true} : vector<4x8x1xf32> -> vector<4x8x1xf32>
    %96 = vector.broadcast %95 : vector<4x8x1xf32> to vector<4x8x16xf32>
    %97 = arith.mulf %92, %96 : vector<4x8x16xf32>
    %98 = arith.truncf %97 : vector<4x8x16xf32> to vector<4x8x16xbf16>
    %cst_47 = arith.constant dense<0.000000e+00> : vector<4x8x8xf32>
    %99 = tpu.matmul %98, %83, %cst_47 {dimension_numbers = #tpu.dot_dimension_numbers<[2], [1], [1], [2], [0, 0, 0, 1, 1, 2], [0], [0]>} : vector<4x8x16xbf16>, vector<4x16x8xbf16>, vector<4x8x8xf32> -> vector<4x8x8xf32>
    %100 = tpu.transpose %99, [1, 0, 2] : vector<4x8x8xf32> -> vector<8x4x8xf32>
    %101 = vector.shape_cast %100 : vector<8x4x8xf32> to vector<8x32xf32>
    %102 = arith.truncf %101 : vector<8x32xf32> to vector<8x32xbf16>
    %c0_48 = arith.constant 0 : index
    %c0_49 = arith.constant 0 : index
    %103 = vector.load %arg15[%c0_48, %c0_49] : memref<32x32xbf16, #tpu.memory_space<vmem>>, vector<32x32xbf16>
    %cst_50 = arith.constant dense<0.000000e+00> : vector<8x32xf32>
    %104 = tpu.matmul %102, %103, %cst_50 {dimension_numbers = #tpu.dot_dimension_numbers<[1], [0], [0], [1], [0, 0, 1, 1], [], []>} : vector<8x32xbf16>, vector<32x32xbf16>, vector<8x32xf32> -> vector<8x32xf32>
    %c0_51 = arith.constant 0 : index
    %c0_52 = arith.constant 0 : index
    %105 = vector.load %arg16[%c0_51, %c0_52] : memref<1x32xf32, #tpu.memory_space<vmem>>, vector<1x32xf32>
    %106 = vector.broadcast %105 : vector<1x32xf32> to vector<8x32xf32>
    %107 = arith.addf %104, %106 : vector<8x32xf32>
    %108 = arith.addf %73, %107 : vector<8x32xf32>
    %cst_53 = arith.constant dense<0.000000e+00> : vector<8xf32>
    %109 = vector.multi_reduction <add>, %108, %cst_53 [1] : vector<8x32xf32> to vector<8xf32>
    %110 = vector.shape_cast %109 : vector<8xf32> to vector<8x1xf32>
    %cst_54 = arith.constant 3.200000e+01 : f32
    %111 = vector.broadcast %cst_54 : f32 to vector<8x1xf32>
    %112 = arith.divf %110, %111 : vector<8x1xf32>
    %113 = vector.broadcast %112 : vector<8x1xf32> to vector<8x32xf32>
    %114 = arith.subf %108, %113 : vector<8x32xf32>
    %115 = arith.mulf %114, %114 : vector<8x32xf32>
    %cst_55 = arith.constant dense<0.000000e+00> : vector<8xf32>
    %116 = vector.multi_reduction <add>, %115, %cst_55 [1] : vector<8x32xf32> to vector<8xf32>
    %117 = vector.shape_cast %116 : vector<8xf32> to vector<8x1xf32>
    %cst_56 = arith.constant 3.200000e+01 : f32
    %118 = vector.broadcast %cst_56 : f32 to vector<8x1xf32>
    %119 = arith.divf %117, %118 : vector<8x1xf32>
    %120 = vector.broadcast %112 : vector<8x1xf32> to vector<8x32xf32>
    %121 = arith.subf %108, %120 : vector<8x32xf32>
    %cst_57 = arith.constant 9.99999997E-7 : f32
    %122 = vector.broadcast %cst_57 : f32 to vector<8x1xf32>
    %123 = arith.addf %119, %122 : vector<8x1xf32>
    %124 = math.rsqrt %123 : vector<8x1xf32>
    %125 = vector.broadcast %124 : vector<8x1xf32> to vector<8x32xf32>
    %126 = arith.mulf %121, %125 : vector<8x32xf32>
    %cst_58 = arith.constant 1.000000e+00 : f32
    %127 = vector.broadcast %cst_58 : f32 to vector<1x32xf32>
    %128 = arith.addf %127, %6 : vector<1x32xf32>
    %129 = vector.broadcast %128 : vector<1x32xf32> to vector<8x32xf32>
    %130 = arith.mulf %126, %129 : vector<8x32xf32>
    %131 = vector.broadcast %5 : vector<1x32xf32> to vector<8x32xf32>
    %132 = arith.addf %130, %131 : vector<8x32xf32>
    %133 = arith.truncf %132 : vector<8x32xf32> to vector<8x32xbf16>
    %c0_59 = arith.constant 0 : index
    %c0_60 = arith.constant 0 : index
    %134 = vector.load %arg17[%c0_59, %c0_60] : memref<32x128xbf16, #tpu.memory_space<vmem>>, vector<32x128xbf16>
    %cst_61 = arith.constant dense<0.000000e+00> : vector<8x128xf32>
    %135 = tpu.matmul %133, %134, %cst_61 {dimension_numbers = #tpu.dot_dimension_numbers<[1], [0], [0], [1], [0, 0, 1, 1], [], []>} : vector<8x32xbf16>, vector<32x128xbf16>, vector<8x128xf32> -> vector<8x128xf32>
    %c0_62 = arith.constant 0 : index
    %c0_63 = arith.constant 0 : index
    %136 = vector.load %arg18[%c0_62, %c0_63] : memref<1x128xf32, #tpu.memory_space<vmem>>, vector<1x128xf32>
    %137 = vector.broadcast %136 : vector<1x128xf32> to vector<8x128xf32>
    %138 = arith.addf %135, %137 : vector<8x128xf32>
    %cst_64 = arith.constant 5.000000e-01 : f32
    %139 = vector.broadcast %cst_64 : f32 to vector<8x128xf32>
    %140 = arith.mulf %139, %138 : vector<8x128xf32>
    %cst_65 = arith.constant 4.471500e-02 : f32
    %141 = vector.broadcast %cst_65 : f32 to vector<8x128xf32>
    %142 = arith.mulf %141, %138 : vector<8x128xf32>
    %143 = arith.mulf %142, %138 : vector<8x128xf32>
    %144 = arith.mulf %143, %138 : vector<8x128xf32>
    %145 = arith.addf %138, %144 : vector<8x128xf32>
    %cst_66 = arith.constant 0.797884583 : f32
    %146 = vector.broadcast %cst_66 : f32 to vector<8x128xf32>
    %147 = arith.mulf %146, %145 : vector<8x128xf32>
    %148 = math.tanh %147 : vector<8x128xf32>
    %cst_67 = arith.constant 1.000000e+00 : f32
    %149 = vector.broadcast %cst_67 : f32 to vector<8x128xf32>
    %150 = arith.addf %149, %148 : vector<8x128xf32>
    %151 = arith.mulf %140, %150 : vector<8x128xf32>
    %152 = arith.truncf %151 : vector<8x128xf32> to vector<8x128xbf16>
    %c0_68 = arith.constant 0 : index
    %c0_69 = arith.constant 0 : index
    %153 = vector.load %arg19[%c0_68, %c0_69] : memref<128x32xbf16, #tpu.memory_space<vmem>>, vector<128x32xbf16>
    %cst_70 = arith.constant dense<0.000000e+00> : vector<8x32xf32>
    %154 = tpu.matmul %152, %153, %cst_70 {dimension_numbers = #tpu.dot_dimension_numbers<[1], [0], [0], [1], [0, 0, 1, 1], [], []>} : vector<8x128xbf16>, vector<128x32xbf16>, vector<8x32xf32> -> vector<8x32xf32>
    %c0_71 = arith.constant 0 : index
    %c0_72 = arith.constant 0 : index
    %155 = vector.load %arg20[%c0_71, %c0_72] : memref<1x32xf32, #tpu.memory_space<vmem>>, vector<1x32xf32>
    %156 = vector.broadcast %155 : vector<1x32xf32> to vector<8x32xf32>
    %157 = arith.addf %154, %156 : vector<8x32xf32>
    %158 = vector.broadcast %7 : vector<1x32xf32> to vector<8x32xf32>
    %159 = arith.mulf %158, %157 : vector<8x32xf32>
    %160 = arith.addf %108, %159 : vector<8x32xf32>
    %c0_73 = arith.constant 0 : index
    %c0_74 = arith.constant 0 : index
    %c0_75 = arith.constant 0 : index
    %161 = vector.load %arg21[%c0_73, %c0_74, %c0_75] : memref<1x8x32xf32, #tpu.memory_space<vmem>>, vector<1x8x32xf32>
    %162 = vector.shape_cast %161 : vector<1x8x32xf32> to vector<8x32xf32>
    %163 = vector.shape_cast %160 : vector<8x32xf32> to vector<1x8x32xf32>
    tpu.vector_store %arg21[%c0_73, %c0_74, %c0_75], %163 {strides = array<i32>} : memref<1x8x32xf32, #tpu.memory_space<vmem>>, vector<1x8x32xf32>,
    return
  }
  func.func @transform_0(%arg0: i32, %arg1: i32) -> (i32, i32, i32) {
    %c0_i32 = arith.constant 0 : i32
    %c0_i32_0 = arith.constant 0 : i32
    %c0_i32_1 = arith.constant 0 : i32
    return %arg0, %c0_i32, %c0_i32_0 : i32, i32, i32
  }
  func.func @transform_1(%arg0: i32, %arg1: i32) -> (i32, i32, i32) {
    %c0_i32 = arith.constant 0 : i32
    %c0_i32_0 = arith.constant 0 : i32
    return %arg0, %arg1, %c0_i32 : i32, i32, i32
  }
  func.func @transform_2(%arg0: i32, %arg1: i32) -> (i32, i32, i32) {
    %c0_i32 = arith.constant 0 : i32
    %c0_i32_0 = arith.constant 0 : i32
    %c0_i32_1 = arith.constant 0 : i32
    return %arg0, %c0_i32, %c0_i32_0 : i32, i32, i32
  }
  func.func @transform_3(%arg0: i32, %arg1: i32) -> (i32, i32, i32) {
    %c0_i32 = arith.constant 0 : i32
    %c0_i32_0 = arith.constant 0 : i32
    %c0_i32_1 = arith.constant 0 : i32
    %c0_i32_2 = arith.constant 0 : i32
    return %c0_i32, %c0_i32_0, %c0_i32_1 : i32, i32, i32
  }
  func.func @transform_4(%arg0: i32, %arg1: i32) -> (i32, i32, i32) {
    %c0_i32 = arith.constant 0 : i32
    %c0_i32_0 = arith.constant 0 : i32
    %c0_i32_1 = arith.constant 0 : i32
    %c0_i32_2 = arith.constant 0 : i32
    return %c0_i32, %c0_i32_0, %c0_i32_1 : i32, i32, i32
  }
  func.func @transform_5(%arg0: i32, %arg1: i32) -> (i32, i32) {
    %c0_i32 = arith.constant 0 : i32
    %c0_i32_0 = arith.constant 0 : i32
    %c0_i32_1 = arith.constant 0 : i32
    return %c0_i32, %c0_i32_0 : i32, i32
  }
  func.func @transform_6(%arg0: i32, %arg1: i32) -> (i32, i32) {
    %c0_i32 = arith.constant 0 : i32
    %c0_i32_0 = arith.constant 0 : i32
    %c0_i32_1 = arith.constant 0 : i32
    return %c0_i32, %c0_i32_0 : i32, i32
  }
  func.func @transform_7(%arg0: i32, %arg1: i32) -> (i32, i32) {
    %c0_i32 = arith.constant 0 : i32
    %c0_i32_0 = arith.constant 0 : i32
    %c0_i32_1 = arith.constant 0 : i32
    return %c0_i32, %c0_i32_0 : i32, i32
  }
  func.func @transform_8(%arg0: i32, %arg1: i32) -> (i32, i32) {
    %c0_i32 = arith.constant 0 : i32
    %c0_i32_0 = arith.constant 0 : i32
    %c0_i32_1 = arith.constant 0 : i32
    return %c0_i32, %c0_i32_0 : i32, i32
  }
  func.func @transform_9(%arg0: i32, %arg1: i32) -> (i32, i32) {
    %c0_i32 = arith.constant 0 : i32
    %c0_i32_0 = arith.constant 0 : i32
    %c0_i32_1 = arith.constant 0 : i32
    return %c0_i32, %c0_i32_0 : i32, i32
  }
  func.func @transform_10(%arg0: i32, %arg1: i32) -> (i32, i32) {
    %c0_i32 = arith.constant 0 : i32
    %c0_i32_0 = arith.constant 0 : i32
    %c0_i32_1 = arith.constant 0 : i32
    return %c0_i32, %c0_i32_0 : i32, i32
  }
  func.func @transform_11(%arg0: i32, %arg1: i32) -> (i32, i32) {
    %c0_i32 = arith.constant 0 : i32
    %c0_i32_0 = arith.constant 0 : i32
    %c0_i32_1 = arith.constant 0 : i32
    return %c0_i32, %c0_i32_0 : i32, i32
  }
  func.func @transform_12(%arg0: i32, %arg1: i32) -> (i32, i32) {
    %c0_i32 = arith.constant 0 : i32
    %c0_i32_0 = arith.constant 0 : i32
    %c0_i32_1 = arith.constant 0 : i32
    return %c0_i32, %c0_i32_0 : i32, i32
  }
  func.func @transform_13(%arg0: i32, %arg1: i32) -> (i32, i32) {
    %c0_i32 = arith.constant 0 : i32
    %c0_i32_0 = arith.constant 0 : i32
    %c0_i32_1 = arith.constant 0 : i32
    return %c0_i32, %c0_i32_0 : i32, i32
  }
  func.func @transform_14(%arg0: i32, %arg1: i32) -> (i32, i32) {
    %c0_i32 = arith.constant 0 : i32
    %c0_i32_0 = arith.constant 0 : i32
    %c0_i32_1 = arith.constant 0 : i32
    return %c0_i32, %c0_i32_0 : i32, i32
  }
  func.func @transform_15(%arg0: i32, %arg1: i32) -> (i32, i32) {
    %c0_i32 = arith.constant 0 : i32
    %c0_i32_0 = arith.constant 0 : i32
    %c0_i32_1 = arith.constant 0 : i32
    return %c0_i32, %c0_i32_0 : i32, i32
  }
  func.func @transform_16(%arg0: i32, %arg1: i32) -> (i32, i32) {
    %c0_i32 = arith.constant 0 : i32
    %c0_i32_0 = arith.constant 0 : i32
    %c0_i32_1 = arith.constant 0 : i32
    return %c0_i32, %c0_i32_0 : i32, i32
  }
  func.func @transform_17(%arg0: i32, %arg1: i32) -> (i32, i32) {
    %c0_i32 = arith.constant 0 : i32
    %c0_i32_0 = arith.constant 0 : i32
    %c0_i32_1 = arith.constant 0 : i32
    return %c0_i32, %c0_i32_0 : i32, i32
  }
  func.func @transform_18(%arg0: i32, %arg1: i32) -> (i32, i32) {
    %c0_i32 = arith.constant 0 : i32
    %c0_i32_0 = arith.constant 0 : i32
    %c0_i32_1 = arith.constant 0 : i32
    return %c0_i32, %c0_i32_0 : i32, i32
  }
  func.func @transform_19(%arg0: i32, %arg1: i32) -> (i32, i32, i32) {
    %c0_i32 = arith.constant 0 : i32
    %c0_i32_0 = arith.constant 0 : i32
    return %arg0, %arg1, %c0_i32 : i32, i32, i32
  }
}

</mosaic_0001>

<bundles_post_ra>
// kernel: block_forward.1
= control target key start
LH: loop header
LB: loop body
LE: loop exit
PB: predicated region body
PF: predicated region fallthrough
CT: control target
= control target key end

     0   :  { %s5641_s30 = smov 0   ;;  %s5643_s20 = smov 0   ;;  %s6462_s0 = inlined_call_operand.vmem [shape: f32[2,40,32], index: 0, kind: input, shape index: {}, may-alias: {0,1}]   ;;  %s6463_s1 = inlined_call_operand.vmem [shape: f32[2,40,32], index: 1, kind: input, shape index: {}, may-alias: {0,1}]   ;;  %s6464_s2 = inlined_call_operand.vmem [shape: f32[2,6,32], index: 2, kind: input, shape index: {}]   ;;  %s6465_s3 = inlined_call_operand.vmem [shape: bf16[4,16,8], index: 3, kind: input, shape index: {}]   ;;  %s6466_s4 = inlined_call_operand.vmem [shape: bf16[4,16,8], index: 4, kind: input, shape index: {}]   ;;  %s6467_s5 = inlined_call_operand.vmem [shape: bf16[32,32], index: 5, kind: input, shape index: {}]   ;;  %s6468_s6 = inlined_call_operand.vmem [shape: f32[1,32], index: 6, kind: input, shape index: {}]   ;;  %s6469_s7 = inlined_call_operand.vmem [shape: bf16[32,64], index: 7, kind: input, shape index: {}]   ;;  %s6470_s8 = inlined_call_operand.vmem [shape: f32[1,64], index: 8, kind: input, shape index: {}]   ;;  %s6471_s9 = inlined_call_operand.vmem [shape: bf16[32,32], index: 9, kind: input, shape index: {}]   ;;  %s6472_s10 = inlined_call_operand.vmem [shape: f32[1,32], index: 10, kind: input, shape index: {}]   ;;  %s6473_s11 = inlined_call_operand.vmem [shape: bf16[32,32], index: 11, kind: input, shape index: {}]   ;;  %s6474_s12 = inlined_call_operand.vmem [shape: f32[1,32], index: 12, kind: input, shape index: {}]   ;;  %s6475_s13 = inlined_call_operand.vmem [shape: bf16[32,32], index: 13, kind: input, shape index: {}]   ;;  %s6476_s14 = inlined_call_operand.vmem [shape: f32[1,32], index: 14, kind: input, shape index: {}]   ;;  %s6477_s15 = inlined_call_operand.vmem [shape: bf16[32,128], index: 15, kind: input, shape index: {}]   ;;  %s6478_s16 = inlined_call_operand.vmem [shape: f32[1,128], index: 16, kind: input, shape index: {}]   ;;  %s6479_s17 = inlined_call_operand.vmem [shape: bf16[128,32], index: 17, kind: input, shape index: {}]   ;;  %s6480_s18 = inlined_call_operand.vmem [shape: f32[1,32], index: 18, kind: input, shape index: {}]   ;;  %s6481_s19 = inlined_call_operand.vmem [shape: f32[2,40,32], index: 19, kind: output, shape index: {}]  }
   0x1   :  { %6490 = sst [smem:[#allocation9_spill]] %s6462_s0  ;;  %s5639_s0 = smov 0  }
   0x2   :  { %6491 = sst [smem:[#allocation10_spill]] %s6463_s1  ;;  %s5645_s21 = smov 0  }
   0x3   :  { %6492 = sst [smem:[#allocation11_spill]] %s6464_s2  ;;  %s5647_s1 = smov 0  }
   0x4   :  { %6493 = sst [smem:[#allocation12_spill]] %s6465_s3 }
   0x5   :  { %6494 = sst [smem:[#allocation13_spill]] %s6466_s4 }
   0x6   :  { %6495 = sst [smem:[#allocation14_spill]] %s6475_s13 }
   0x7   :  { %6496 = sst [smem:[#allocation15_spill]] %s6476_s14 }
   0x8   :  { %6497 = sst [smem:[#allocation16_spill]] %s6477_s15 }
   0x9   :  { %6498 = sst [smem:[#allocation17_spill]] %s6478_s16 }
   0xa   :  { %6499 = sst [smem:[#allocation18_spill]] %s6479_s17 }
   0xb   :  { %6500 = sst [smem:[#allocation19_spill]] %s6480_s18 }
   0xc LB: > { %6501 = sst [smem:[#allocation4_spill]] %s5511_s20  ;;  %s38_s22 = sadd.s32 1, %s5511_s20  ;;  %s5519_s1 = sphi %s5647_s1, %s29_s1   ;;  %s5515_s21 = sphi %s5645_s21, %s6523_s21   ;;  %s5511_s20 = sphi %s5643_s20, %s6522_s20   ;;  %s5507_s30 = sphi %s5641_s30, %s6521_s30   ;;  %s5503_s0 = sphi %s5639_s0, %s6520_s0  }
   0xd   : > { %6502 = sst [smem:[#allocation5_spill]] %s5515_s21  ;;  %s41_s2 = sadd.s32 1, %s5515_s21 }
   0xe   : > { %6503 = sst [smem:[#allocation6_spill]] %s5519_s1  ;;  %p39_p0 = scmp.ge.s32.totalorder %s38_s22, 5 }
   0xf   : > { %p4837_p1 = scmp.ge.s32.totalorder %s5519_s1, 1  ;;  %p575_p2 = scmp.lt.s32.totalorder %s5519_s1, 11 }
  0x10   : > { %s6525_s22 = smov (%p39_p0, %s38_s22), 0  ;;  %s6527_s2 = smov (!%p39_p0, %s41_s2), %s5515_s21 }
  0x11   : > { %6504 = sst [smem:[#allocation7_spill]] %s6525_s22  ;;  %p576_p3 = pnand %p4837_p1, %p575_p2 }
  0x12   : > { %p43_p4 = scmp.ge.s32.totalorder %s6527_s2, 2  ;;  %p646_p5 = scmp.lt.s32.totalorder (!%p576_p3), %s5507_s30, 1 }
  0x13   : > { %579 = sbr.rel (%p576_p3) target bundleno = 4681 (0x1249), region = 96  ;;  %p653_p6 = scmp.lt.s32.totalorder (!%p576_p3), %s5503_s0, 4 }
  0x14   : > { %s6529_s2 = smov (%p43_p4, %s6527_s2), 0  ;;  %s6506_s28 = sld [smem:[#allocation11_spill]] (!%p576_p3) }
  0x15   : > { %6505 = sst [smem:[#allocation8_spill]] %s6529_s2  ;;  %p4842_p7 = scmp.ne.s32.totalorder (!%p576_p3), %s5503_s0, 0 }
  0x16   : > { %s6507_s20 = sld [smem:[#allocation9_spill]] (!%p576_p3) }
  0x17   : > { %s6508_s15 = sld [smem:[#allocation10_spill]] (!%p576_p3) }
  0x18   : > { %s6531_s30 = smov (!%p646_p5, %s5507_s30), 1  ;;  %s5525_s21 = smov (!%p4842_p7), 104  }
  0x19   : > { %s654_s23 = scalar_select %p653_p6, %s5503_s0, 4 }
  0x1a   : > { %s5321_s24 = smul.u32 40, %s6531_s30  ;;  %s4840_s25 = sshll.u32 %s6531_s30, 3 }
  0x1b   : > { %s5322_s3 = smul.u32 5, %s6531_s30  ;;  %s662_s29 = scalar_lea.vmem %s6506_s28, %s4840_s25 }
  0x1c   : > { %s650_s1 = scalar_lea.vmem %s6507_s20, %s5321_s24  ;;  %v5679_v0 = vld [vmem:[%s662_s29] sm:$0x3f]  ;;  %676 = sbr.rel (%p4842_p7) target bundleno = 845 (0x34d), region = 100 }
  0x1d   : > { %s656_s2 = sadd.s32 %s5322_s3, %s654_s23  ;;  %s5523_s0 = smov (!%p4842_p7), 120  }
  0x1e   : > { %s4839_s18 = sshll.u32 %s656_s2, 3  ;;  %s5524_s20 = smov (!%p4842_p7), 112  }
  0x1f   : > { %s5684_s14 = scalar_lea.vmem %s6508_s15, %s4839_s18  ;;  %s5689_s30 = scalar_lea.vmem %s6481_s19, %s4839_s18 }
  0x21   : > { %v679_v1 = vld [vmem:[%s650_s1 + $0x10] sm:$0xff]  ;;  %vm682_vm0 = vcmask 261120   ;;  %v680_v2 = vld [vmem:[%s650_s1 + $0x18] sm:$0xff]  ;;  %v677_v3 = vld [vmem:[%s650_s1] sm:$0xff]  ;;  %v5521_v37 = vmov 0.0   ;;  %vm5522_vm1 = vmmov 0   ;;  %v750_v48 = vlaneseq }
  0x22   : > { %v689_v4 = vsel %vm682_vm0, %v679_v1, 0.0  ;;  %v683_v5 = vsel %vm682_vm0, %v677_v3, 0.0  ;;  %v678_v6 = vld [vmem:[%s650_s1 + $0x8] sm:$0xff]  ;;  %v692_v7 = vsel %vm682_vm0, %v680_v2, 0.0  ;;  %v681_v9 = vld [vmem:[%s650_s1 + $0x20] sm:$0xff]  ;;  %5317 = vmatprep.subr.bf16.mxu1 %v5521_v37  ;;  %5113 = vmatprep.subr.bf16.mxu0 %v5521_v37  ;;  %v749_v56 = vadd.f32 1.0, %v5679_v0 }
  0x23   : > { %690 = vadd.xlane.f32.xlu0 %v689_v4  ;;  %684 = vadd.xlane.f32.xlu1 %v683_v5  ;;  %v686_v8 = vsel %vm682_vm0, %v678_v6, 0.0  ;;  %v695_v10 = vsel %vm682_vm0, %v681_v9, 0.0  ;;  %v5381_v36 = vld [vmem:[%s6469_s7 + $0x8] sm:$0xff]   ;;  %v5382_v38 = vld [vmem:[%s6469_s7] sm:$0xff]   ;;  %v5726_v55 = vshrl.u32 %v750_v48, 7  ;;  %s5526_s1 = smov 96  }
  0x24   : > { %5319 = vmatpush3.bf16.msra.mxu1 %v5381_v36  ;;  %5114 = vmatpush3.bf16.msra.mxu0 %v5381_v36  ;;  %vm1673_vm2 = vcmask 60416  }
  0x25   : > { %5318 = vmatprep.subr.bf16.mxu1 %v5521_v37  ;;  %5121 = vmatprep.mubr.msk.bf16.mxu1 %vm5522_vm1, %v5521_v37  ;;  %v752_v57 = vsub.s32 1, %v5726_v55  ;;  %v761_v61 = vsub.s32 0, %v5726_v55 }
  0x26   : > { %5115 = vmatprep.subr.bf16.mxu0 %v5521_v37  ;;  %5117 = vmatprep.mubr.msk.bf16.mxu0 %vm5522_vm1, %v5521_v37 }
  0x27   : > { %693 = vadd.xlane.f32.xlu0 %v692_v7  ;;  %687 = vadd.xlane.f32.xlu1 %v686_v8  ;;  %v753_v60 = vrot.slane %v749_v56, %v752_v57 }
  0x28   : > { %5320 = vmatpush3.bf16.msra.mxu1 %v5382_v38  ;;  %5116 = vmatpush3.bf16.msra.mxu0 %v5382_v38 }
  0x2b   : > { %696 = vadd.xlane.f32.xlu0 %v695_v10 }
  0xac   : > { %v691_v11 = vpop.xlane.xlu0 %690  ;;  %v685_v12 = vpop.xlane.xlu1 %684 }
  0xad   : > { %v701_v13 = vmul.f32 0.03125, %v691_v11  ;;  %v699_v14 = vmul.f32 0.03125, %v685_v12 }
  0xaf   : > { %v5697_v15 = vsub.f32 %v679_v1, %v701_v13  ;;  %v5699_v16 = vsub.f32 %v677_v3, %v699_v14  ;;  %v762_v3 = vrot.slane %v5679_v0, %v761_v61 }
  0xb0   : > { %v694_v17 = vpop.xlane.xlu0 %693  ;;  %v688_v18 = vpop.xlane.xlu1 %687 }
  0xb1   : > { %v702_v19 = vmul.f32 0.03125, %v694_v17  ;;  %v711_v20 = vmul.f32 %v5697_v15, %v5697_v15  ;;  %v700_v21 = vmul.f32 0.03125, %v688_v18  ;;  %v709_v22 = vmul.f32 %v5699_v16, %v5699_v16 }
  0xb3   : > { %v707_v23 = vsub.f32 %v680_v2, %v702_v19  ;;  %v720_v24 = vsel %vm682_vm0, %v711_v20, 0.0  ;;  %v5706_v25 = vsub.f32 %v678_v6, %v700_v21  ;;  %v714_v29 = vsel %vm682_vm0, %v709_v22, 0.0  ;;  %v4843_v21 = vld [vmem:[%s6470_s8] ss:$0 sm:$0xff] }
  0xb4   : > { %v697_v26 = vpop.xlane.xlu0 %696  ;;  %721 = vadd.xlane.f32.xlu1 %v720_v24 }
  0xb5   : > { %v703_v27 = vmul.f32 0.03125, %v697_v26  ;;  %v712_v28 = vmul.f32 %v707_v23, %v707_v23  ;;  %v710_v30 = vmul.f32 %v5706_v25, %v5706_v25 }
  0xb7   : > { %v5711_v31 = vsub.f32 %v681_v9, %v703_v27  ;;  %v723_v32 = vsel %vm682_vm0, %v712_v28, 0.0  ;;  %v717_v34 = vsel %vm682_vm0, %v710_v30, 0.0 }
  0xb8   : > { %724 = vadd.xlane.f32.xlu0 %v723_v32  ;;  %715 = vadd.xlane.f32.xlu1 %v714_v29 }
  0xb9   : > { %v713_v33 = vmul.f32 %v5711_v31, %v5711_v31 }
  0xbb   : > { %v726_v35 = vsel %vm682_vm0, %v713_v33, 0.0 }
  0xbc   : > { %727 = vadd.xlane.f32.xlu1 %v726_v35  ;;  %718 = vadd.xlane.f32.xlu0 %v717_v34 }
 0x13d   : > { %v722_v39 = vpop.xlane.xlu1 %721 }
 0x13e   : > { %v731_v40 = vmul.f32 0.03125, %v722_v39  ;;  %v5527_v39 = vmov 1983009808  }
 0x140   : > { %v736_v41 = vadd.f32 1e-06, %v731_v40  ;;  %v912_v40 = vunpack.c.l.s4 %v5527_v39 }
 0x141   : > { %v725_v42 = vpop.xlane.xlu0 %724  ;;  %v716_v43 = vpop.xlane.xlu1 %715 }
 0x142   : > { %5383 = vrsqrt.f32 %v736_v41  ;;  %v732_v44 = vmul.f32 0.03125, %v725_v42  ;;  %v729_v45 = vmul.f32 0.03125, %v716_v43  ;;  %v5528_v42 = vmov 1934713408  }
 0x143   : > { %v944_v43 = vunpack.c.l.s4 %v5528_v42 }
 0x144   : > { %v737_v46 = vadd.f32 1e-06, %v732_v44  ;;  %v734_v47 = vadd.f32 1e-06, %v729_v45  ;;  %v913_v44 = vunpack.c.0.s8 %v912_v40 }
 0x145   : > { %v719_v49 = vpop.xlane.xlu0 %718  ;;  %v728_v50 = vpop.xlane.xlu1 %727 }
 0x146   : > { %5385 = vrsqrt.f32 %v737_v46  ;;  %v730_v51 = vmul.f32 0.03125, %v719_v49  ;;  %v733_v52 = vmul.f32 0.03125, %v728_v50  ;;  %v5775_v48 = vsub.s32 %v913_v44, %v5726_v55 }
 0x147   : > { %5387 = vrsqrt.f32 %v734_v47  ;;  %v945_v47 = vunpack.c.0.s8 %v944_v43 }
 0x148   : > { %v735_v53 = vadd.f32 1e-06, %v730_v51  ;;  %v738_v54 = vadd.f32 1e-06, %v733_v52 }
 0x149   : > { %v5779_v56 = vsub.s32 %v945_v47, %v5726_v55 }
 0x14a   : > { %5389 = vrsqrt.f32 %v735_v53 }
 0x14b   : > { %5391 = vrsqrt.f32 %v738_v54 }
 0x14f   : > { %v5384_v58 = vpop.eup %5383 }
 0x150   : > { %v746_v59 = vmul.f32 %v5384_v58, %v5697_v15 }
 0x152   : > { %v756_v2 = vmul.f32 %v753_v60, %v746_v59 }
 0x153   : > { %v5386_v62 = vpop.eup %5385 }
 0x154   : > { %v5388_v63 = vpop.eup %5387  ;;  %v747_v1 = vmul.f32 %v5386_v62, %v707_v23  ;;  %v765_v8 = vadd.f32 %v762_v3, %v756_v2 }
 0x155   : > { %v744_v4 = vmul.f32 %v5388_v63, %v5699_v16 }
 0x156   : > { %v757_v5 = vmul.f32 %v753_v60, %v747_v1 }
 0x157   : > { %v5390_v6 = vpop.eup %5389  ;;  %v754_v11 = vmul.f32 %v753_v60, %v744_v4 }
 0x158   : > { %v5392_v7 = vpop.eup %5391  ;;  %v766_v9 = vadd.f32 %v762_v3, %v757_v5  ;;  %v745_v10 = vmul.f32 %v5390_v6, %v5706_v25 }
 0x159   : > { %v748_v12 = vmul.f32 %v5392_v7, %v5711_v31  ;;  %v763_v17 = vadd.f32 %v762_v3, %v754_v11 }
 0x15a   : > { %v769_v13 = vpack.c.bf16 %v766_v9, %v765_v8  ;;  %v755_v14 = vmul.f32 %v753_v60, %v745_v10 }
 0x15b   : > { %v758_v15 = vmul.f32 %v753_v60, %v748_v12 }
 0x15c   : > { %5122 = vmatmul.mubr.msk.bf16.vlgmr.msra.gmra.mxu1 %vm682_vm0, %v769_v13  ;;  %v764_v18 = vadd.f32 %v762_v3, %v755_v14 }
 0x15d   : > { %5125 = vmatprep.mubr.msk.bf16.mxu1 %vm5522_vm1, %v5521_v37  ;;  %v767_v19 = vadd.f32 %v762_v3, %v758_v15 }
 0x15e   : > { %v768_v16 = vpack.c.bf16 %v764_v18, %v763_v17 }
 0x15f   : > { %v770_v20 = vpack.c.bf16 %v767_v19, %v767_v19 }
 0x160   : > { %5118 = vmatmul.mubr.msk.bf16.vlgmr.msra.gmra.mxu0 %vm682_vm0, %v768_v16 }
 0x164   : > { %5126 = vmatmul.mubr.msk.bf16.gmra.mxu1 %vm682_vm0, %v770_v20 }
 0x21c   : > { %v845_v22 = vpop.f32.mrf.mxu1 }
 0x21d   : > { %v5743_v23 = vadd.f32 %v4843_v21, %v845_v22 }
 0x21e   : > { %v5123_v24 = vpop.f32.mrf.mxu1 }
 0x21f   : > { %868 = vrot.lane.b32.xlu1 %v5743_v23, %s5523_s0 }
 0x220   : > { %v837_v25 = vpop.f32.mrf.mxu0  ;;  %v848_v26 = vpop.f32.mrf.mxu1 }
 0x221   : > { %v838_v27 = vadd.f32 %v4843_v21, %v837_v25  ;;  %v5751_v37 = vadd.f32 %v4843_v21, %v848_v26 }
 0x222   : > { %v5119_v28 = vpop.f32.mrf.mxu0  ;;  %v5124_v29 = vpop.f32.mrf.mxu1 }
 0x223   : > { %879 = vrot.lane.b32.xlu1 %v838_v27, %s5524_s20  ;;  %864 = vrot.lane.b32.xlu0 %v838_v27, %s5523_s0 }
 0x224   : > { %v840_v30 = vpop.f32.mrf.mxu0  ;;  %v853_v31 = vpop.f32.mrf.mxu1 }
 0x225   : > { %v5747_v35 = vadd.f32 %v4843_v21, %v840_v30  ;;  %v5757_v38 = vadd.f32 %v4843_v21, %v853_v31 }
 0x226   : > { %v5120_v32 = vpop.f32.mrf.mxu0  ;;  %v5127_v33 = vpop.f32.mrf.mxu1 }
 0x227   : > { %883 = vrot.lane.b32.xlu1 %v5743_v23, %s5524_s20  ;;  %894 = vrot.lane.b32.xlu0 %v838_v27, %s5525_s21 }
 0x228   : > { %v856_v34 = vpop.f32.mrf.mxu1 }
 0x22a   : > { %v5128_v36 = vpop.f32.mrf.mxu1 }
 0x22b   : > { %898 = vrot.lane.b32.xlu0 %v5743_v23, %s5525_s21  ;;  %866 = vrot.lane.b32.xlu1 %v5747_v35, %s5523_s0 }
 0x22f   : > { %881 = vrot.lane.b32.xlu0 %v5747_v35, %s5524_s20  ;;  %870 = vrot.lane.b32.xlu1 %v5751_v37, %s5523_s0 }
 0x233   : > { %885 = vrot.lane.b32.xlu0 %v5751_v37, %s5524_s20  ;;  %896 = vrot.lane.b32.xlu1 %v5747_v35, %s5525_s21 }
 0x237   : > { %887 = vrot.lane.b32.xlu1 %v5757_v38, %s5524_s20  ;;  %872 = vrot.lane.b32.xlu0 %v5757_v38, %s5523_s0 }
 0x23b   : > { %900 = vrot.lane.b32.xlu1 %v5751_v37, %s5525_s21  ;;  %902 = vrot.lane.b32.xlu0 %v5757_v38, %s5525_s21 }
 0x23f   : > { %1694 = vrot.lane.b32.xlu1 %v838_v27, %s5526_s1  ;;  %1696 = vrot.lane.b32.xlu0 %v5747_v35, %s5526_s1 }
 0x243   : > { %1698 = vrot.lane.b32.xlu1 %v5743_v23, %s5526_s1  ;;  %1700 = vrot.lane.b32.xlu0 %v5751_v37, %s5526_s1 }
 0x247   : > { %1702 = vrot.lane.b32.xlu1 %v5757_v38, %s5526_s1 }
 0x291   : > { %v869_v41 = vpop.permute.xlu1 %868 }
 0x295   : > { %v865_v45 = vpop.permute.xlu0 %864  ;;  %v880_v46 = vpop.permute.xlu1 %879 }
 0x296   : > { %1704 = vrot.lane.b32.xlu0 %v865_v45, %s5526_s1  ;;  %1714 = vrot.lane.b32.xlu1 %v880_v46, %s5526_s1  ;;  %v909_v49 = vcombine.low %v838_v27, %v880_v46  ;;  %v910_v50 = vcombine.high %v838_v27, %v880_v46 }
 0x298   : > { %v917_v57 = vrot.slane %v909_v49, %v5775_v48  ;;  %v924_v58 = vrot.slane %v910_v50, %v5775_v48 }
 0x299   : > { %v895_v51 = vpop.permute.xlu0 %894  ;;  %v884_v52 = vpop.permute.xlu1 %883 }
 0x29a   : > { %v925_v53 = vcombine.low %v865_v45, %v895_v51  ;;  %v926_v54 = vcombine.high %v865_v45, %v895_v51  ;;  %1708 = vrot.lane.b32.xlu0 %v869_v41, %s5526_s1  ;;  %1718 = vrot.lane.b32.xlu1 %v884_v52, %s5526_s1  ;;  %v1045_v61 = vcombine.low %v5743_v23, %v884_v52 }
 0x29b   : > { %v1046_v62 = vcombine.high %v5743_v23, %v884_v52 }
 0x29c   : > { %v933_v59 = vrot.slane %v925_v53, %v5775_v48  ;;  %v940_v60 = vrot.slane %v926_v54, %v5775_v48  ;;  %v1053_v11 = vrot.slane %v1045_v61, %v5775_v48 }
 0x29d   : > { %v899_v63 = vpop.permute.xlu0 %898  ;;  %v5788_v1 = vpop.permute.xlu1 %866  ;;  %v1060_v12 = vrot.slane %v1046_v62, %v5775_v48 }
 0x29e   : > { %v941_v2 = vcombine.low %v917_v57, %v933_v59  ;;  %v942_v55 = vcombine.high %v917_v57, %v933_v59  ;;  %v957_v3 = vcombine.low %v924_v58, %v940_v60  ;;  %v958_v4 = vcombine.high %v924_v58, %v940_v60  ;;  %1724 = vrot.lane.b32.xlu0 %v895_v51, %s5526_s1 }
 0x29f   : > { %v1061_v5 = vcombine.low %v869_v41, %v899_v63  ;;  %v1062_v6 = vcombine.high %v869_v41, %v899_v63  ;;  %1706 = vrot.lane.b32.xlu1 %v5788_v1, %s5526_s1 }
 0x2a0   : > { %v949_v7 = vrot.slane %v941_v2, %v5779_v56  ;;  %v956_v8 = vrot.slane %v942_v55, %v5779_v56  ;;  %v965_v9 = vrot.slane %v957_v3, %v5779_v56  ;;  %v972_v10 = vrot.slane %v958_v4, %v5779_v56 }
 0x2a1   : > { %v1069_v13 = vrot.slane %v1061_v5, %v5775_v48  ;;  %v1076_v14 = vrot.slane %v1062_v6, %v5775_v48  ;;  %v5801_v15 = vpop.permute.xlu0 %881  ;;  %v5803_v17 = vpop.permute.xlu1 %870 }
 0x2a2   : > { %v1249_v18 = vcombine.low %v949_v7, %v956_v8  ;;  %v4849_v16 = vcombine.high %v949_v7, %v956_v8  ;;  %v1265_v19 = vcombine.low %v965_v9, %v972_v10  ;;  %v4850_v20 = vcombine.high %v965_v9, %v972_v10  ;;  %1728 = vrot.lane.b32.xlu0 %v899_v63, %s5526_s1 }
 0x2a3   : > { %v1077_v21 = vcombine.low %v1053_v11, %v1069_v13  ;;  %v1078_v22 = vcombine.high %v1053_v11, %v1069_v13  ;;  %v1093_v23 = vcombine.low %v1060_v12, %v1076_v14  ;;  %v1094_v24 = vcombine.high %v1060_v12, %v1076_v14  ;;  %1710 = vrot.lane.b32.xlu1 %v5803_v17, %s5526_s1 }
 0x2a4   : > { %v1256_v25 = vrot.slane %v1249_v18, %v5775_v48  ;;  %v1264_v26 = vrot.slane %v4849_v16, %v5775_v48  ;;  %v1272_v27 = vrot.slane %v1265_v19, %v5775_v48  ;;  %v1280_v28 = vrot.slane %v4850_v20, %v5775_v48 }
 0x2a5   : > { %v1085_v29 = vrot.slane %v1077_v21, %v5779_v56  ;;  %v1092_v30 = vrot.slane %v1078_v22, %v5779_v56  ;;  %v1101_v31 = vrot.slane %v1093_v23, %v5779_v56  ;;  %v1108_v32 = vrot.slane %v1094_v24, %v5779_v56  ;;  %v886_v33 = vpop.permute.xlu0 %885  ;;  %v5816_v34 = vpop.permute.xlu1 %896 }
 0x2a6   : > { %v1281_v36 = vcombine.low %v1256_v25, %v1264_v26  ;;  %v1282_v39 = vcombine.high %v1256_v25, %v1264_v26  ;;  %v1297_v40 = vcombine.low %v1272_v27, %v1280_v28  ;;  %v1298_v41 = vcombine.high %v1272_v27, %v1280_v28  ;;  %1716 = vrot.lane.b32.xlu0 %v5801_v15, %s5526_s1 }
 0x2a7   : > { %v1385_v42 = vcombine.low %v1085_v29, %v1092_v30  ;;  %v4853_v43 = vcombine.high %v1085_v29, %v1092_v30  ;;  %v1401_v44 = vcombine.low %v1101_v31, %v1108_v32  ;;  %v4854_v45 = vcombine.high %v1101_v31, %v1108_v32  ;;  %1726 = vrot.lane.b32.xlu1 %v5816_v34, %s5526_s1 }
 0x2a8   : > { %v1289_v46 = vrot.slane %v1281_v36, %v5779_v56  ;;  %v1296_v47 = vrot.slane %v1282_v39, %v5779_v56  ;;  %v1305_v49 = vrot.slane %v1297_v40, %v5779_v56  ;;  %v1312_v50 = vrot.slane %v1298_v41, %v5779_v56 }
 0x2a9   : > { %v1392_v51 = vrot.slane %v1385_v42, %v5775_v48  ;;  %v1400_v52 = vrot.slane %v4853_v43, %v5775_v48  ;;  %v1408_v53 = vrot.slane %v1401_v44, %v5775_v48  ;;  %v1416_v54 = vrot.slane %v4854_v45, %v5775_v48  ;;  %v888_v57 = vpop.permute.xlu1 %887  ;;  %v873_v62 = vpop.permute.xlu0 %872 }
 0x2aa   : > { %v1313_v58 = vcombine.low %v1289_v46, %v1305_v49  ;;  %v1314_v59 = vcombine.high %v1289_v46, %v1305_v49  ;;  %v1315_v60 = vcombine.low %v1296_v47, %v1312_v50  ;;  %v1316_v61 = vcombine.high %v1296_v47, %v1312_v50  ;;  %1720 = vrot.lane.b32.xlu0 %v886_v33, %s5526_s1 }
 0x2ab   : > { %v1417_v63 = vcombine.low %v1392_v51, %v1400_v52  ;;  %v1418_v2 = vcombine.high %v1392_v51, %v1400_v52  ;;  %v1433_v55 = vcombine.low %v1408_v53, %v1416_v54  ;;  %v1434_v3 = vcombine.high %v1408_v53, %v1416_v54  ;;  %1722 = vrot.lane.b32.xlu1 %v888_v57, %s5526_s1 }
 0x2ac   : > { %v4996_v4 = vpack.c.bf16 %v1313_v58, %v1313_v58  ;;  %v5001_v5 = vpack.c.bf16 %v1314_v59, %v1314_v59  ;;  %v5006_v6 = vpack.c.bf16 %v1315_v60, %v1315_v60  ;;  %v5011_v7 = vpack.c.bf16 %v1316_v61, %v1316_v61 }
 0x2ad   : > { %v1425_v8 = vrot.slane %v1417_v63, %v5779_v56  ;;  %v1432_v9 = vrot.slane %v1418_v2, %v5779_v56  ;;  %v1441_v10 = vrot.slane %v1433_v55, %v5779_v56  ;;  %v1448_v11 = vrot.slane %v1434_v3, %v5779_v56  ;;  %v901_v12 = vpop.permute.xlu1 %900 }
 0x2ae   : > { %1674 = vst.msk [vmem:[#allocation2] sm:$0xf] %vm1673_vm2, %v4996_v4  ;;  %1679 = vst.msk [vmem:[#allocation2 + $0x14] sm:$0xf] %vm1673_vm2, %v5001_v5  ;;  %v977_v13 = vcombine.low %v5747_v35, %v5801_v15  ;;  %v978_v14 = vcombine.high %v5747_v35, %v5801_v15  ;;  %v1113_v18 = vcombine.low %v5751_v37, %v886_v33  ;;  %1712 = vrot.lane.b32.xlu0 %v873_v62, %s5526_s1  ;;  %v903_v15 = vpop.permute.xlu0 %902 }
 0x2af   : > { %1684 = vst.msk [vmem:[#allocation2 + $0x28] sm:$0xf] %vm1673_vm2, %v5006_v6  ;;  %1689 = vst.msk [vmem:[#allocation2 + $0x3c] sm:$0xf] %vm1673_vm2, %v5011_v7  ;;  %v1114_v16 = vcombine.high %v5751_v37, %v886_v33  ;;  %v1449_v19 = vcombine.low %v1425_v8, %v1441_v10  ;;  %v1450_v20 = vcombine.high %v1425_v8, %v1441_v10  ;;  %1730 = vrot.lane.b32.xlu1 %v901_v12, %s5526_s1 }
 0x2b0   : > { %v1451_v21 = vcombine.low %v1432_v9, %v1448_v11  ;;  %v1452_v22 = vcombine.high %v1432_v9, %v1448_v11  ;;  %v985_v23 = vrot.slane %v977_v13, %v5775_v48  ;;  %v992_v24 = vrot.slane %v978_v14, %v5775_v48 }
 0x2b1   : > { %v5851_v25 = vrot.slane %v1113_v18, %v5775_v48  ;;  %v5854_v35 = vrot.slane %v1114_v16, %v5775_v48  ;;  %v4998_v37 = vpack.c.bf16 %v1449_v19, %v1449_v19  ;;  %v5003_v26 = vpack.c.bf16 %v1450_v20, %v1450_v20 }
 0x2b2   : > { %v5008_v27 = vpack.c.bf16 %v1451_v21, %v1451_v21  ;;  %v5013_v28 = vpack.c.bf16 %v1452_v22, %v1452_v22  ;;  %v993_v29 = vcombine.low %v5788_v1, %v5816_v34  ;;  %v994_v30 = vcombine.high %v5788_v1, %v5816_v34  ;;  %1732 = vrot.lane.b32.xlu0 %v903_v15, %s5526_s1 }
 0x2b3   : > { %v1181_v31 = vcombine.low %v5757_v38, %v888_v57  ;;  %v1182_v32 = vcombine.high %v5757_v38, %v888_v57  ;;  %1676 = vst.msk [vmem:[#allocation2 + $0x8] sm:$0xf] %vm1673_vm2, %v4998_v37  ;;  %1681 = vst.msk [vmem:[#allocation2 + $0x1c] sm:$0xf] %vm1673_vm2, %v5003_v26  ;;  %v1197_v33 = vcombine.low %v873_v62, %v903_v15 }
 0x2b4   : > { %1686 = vst.msk [vmem:[#allocation2 + $0x30] sm:$0xf] %vm1673_vm2, %v5008_v27  ;;  %1691 = vst.msk [vmem:[#allocation2 + $0x44] sm:$0xf] %vm1673_vm2, %v5013_v28  ;;  %v1198_v36 = vcombine.high %v873_v62, %v903_v15  ;;  %v1129_v39 = vcombine.low %v5803_v17, %v901_v12  ;;  %v1130_v1 = vcombine.high %v5803_v17, %v901_v12 }
 0x2b5   : > { %v1001_v34 = vrot.slane %v993_v29, %v5775_v48  ;;  %v1008_v38 = vrot.slane %v994_v30, %v5775_v48  ;;  %v1189_v40 = vrot.slane %v1181_v31, %v5775_v48  ;;  %v1196_v41 = vrot.slane %v1182_v32, %v5775_v48 }
 0x2b6   : > { %v1205_v42 = vrot.slane %v1197_v33, %v5775_v48  ;;  %v1212_v43 = vrot.slane %v1198_v36, %v5775_v48  ;;  %v5876_v44 = vrot.slane %v1129_v39, %v5775_v48  ;;  %v5879_v45 = vrot.slane %v1130_v1, %v5775_v48 }
 0x2b7   : > { %v1009_v46 = vcombine.low %v985_v23, %v1001_v34  ;;  %v1010_v17 = vcombine.high %v985_v23, %v1001_v34  ;;  %v1025_v47 = vcombine.low %v992_v24, %v1008_v38  ;;  %v1026_v49 = vcombine.high %v992_v24, %v1008_v38 }
 0x2b8   : > { %v1213_v50 = vcombine.low %v1189_v40, %v1205_v42  ;;  %v1214_v51 = vcombine.high %v1189_v40, %v1205_v42  ;;  %v1229_v52 = vcombine.low %v1196_v41, %v1212_v43  ;;  %v1230_v53 = vcombine.high %v1196_v41, %v1212_v43 }
 0x2b9   : > { %v1017_v54 = vrot.slane %v1009_v46, %v5779_v56  ;;  %v1024_v57 = vrot.slane %v1010_v17, %v5779_v56  ;;  %v1033_v58 = vrot.slane %v1025_v47, %v5779_v56  ;;  %v1040_v59 = vrot.slane %v1026_v49, %v5779_v56 }
 0x2ba   : > { %v1221_v60 = vrot.slane %v1213_v50, %v5779_v56  ;;  %v1228_v61 = vrot.slane %v1214_v51, %v5779_v56  ;;  %v1237_v62 = vrot.slane %v1229_v52, %v5779_v56  ;;  %v1244_v63 = vrot.slane %v1230_v53, %v5779_v56 }
 0x2bb   : > { %v1317_v2 = vcombine.low %v1017_v54, %v1024_v57  ;;  %v4851_v55 = vcombine.high %v1017_v54, %v1024_v57  ;;  %v1333_v3 = vcombine.low %v1033_v58, %v1040_v59  ;;  %v4852_v4 = vcombine.high %v1033_v58, %v1040_v59 }
 0x2bc   : > { %v1521_v5 = vcombine.low %v1221_v60, %v1228_v61  ;;  %v4857_v6 = vcombine.high %v1221_v60, %v1228_v61  ;;  %v1537_v7 = vcombine.low %v1237_v62, %v1244_v63  ;;  %v4858_v8 = vcombine.high %v1237_v62, %v1244_v63 }
 0x2bd   : > { %v1324_v9 = vrot.slane %v1317_v2, %v5775_v48  ;;  %v1332_v10 = vrot.slane %v4851_v55, %v5775_v48  ;;  %v1340_v11 = vrot.slane %v1333_v3, %v5775_v48  ;;  %v1348_v12 = vrot.slane %v4852_v4, %v5775_v48 }
 0x2be   : > { %v1528_v13 = vrot.slane %v1521_v5, %v5775_v48  ;;  %v1536_v14 = vrot.slane %v4857_v6, %v5775_v48  ;;  %v1544_v18 = vrot.slane %v1537_v7, %v5775_v48  ;;  %v1552_v16 = vrot.slane %v4858_v8, %v5775_v48 }
 0x2bf   : > { %v1349_v19 = vcombine.low %v1324_v9, %v1332_v10  ;;  %v1350_v20 = vcombine.high %v1324_v9, %v1332_v10  ;;  %v1365_v21 = vcombine.low %v1340_v11, %v1348_v12  ;;  %v1366_v22 = vcombine.high %v1340_v11, %v1348_v12 }
 0x2c0   : > { %v1553_v23 = vcombine.low %v1528_v13, %v1536_v14  ;;  %v1554_v24 = vcombine.high %v1528_v13, %v1536_v14  ;;  %v1569_v15 = vcombine.low %v1544_v18, %v1552_v16  ;;  %v1570_v37 = vcombine.high %v1544_v18, %v1552_v16 }
 0x2c1   : > { %v1357_v26 = vrot.slane %v1349_v19, %v5779_v56  ;;  %v1364_v27 = vrot.slane %v1350_v20, %v5779_v56  ;;  %v1373_v28 = vrot.slane %v1365_v21, %v5779_v56  ;;  %v1380_v29 = vrot.slane %v1366_v22, %v5779_v56  ;;  %v1695_v22 = vpop.permute.xlu1 %1694 }
 0x2c2   : > { %v1561_v30 = vrot.slane %v1553_v23, %v5779_v56  ;;  %v1568_v31 = vrot.slane %v1554_v24, %v5779_v56  ;;  %v1577_v32 = vrot.slane %v1569_v15, %v5779_v56  ;;  %v1584_v33 = vrot.slane %v1570_v37, %v5779_v56  ;;  %v5937_v23 = vpop.permute.xlu0 %1696 }
 0x2c3   : > { %v1381_v36 = vcombine.low %v1357_v26, %v1373_v28  ;;  %v1382_v39 = vcombine.high %v1357_v26, %v1373_v28  ;;  %v1383_v1 = vcombine.low %v1364_v27, %v1380_v29  ;;  %v1384_v34 = vcombine.high %v1364_v27, %v1380_v29 }
 0x2c4   : > { %v1585_v38 = vcombine.low %v1561_v30, %v1577_v32  ;;  %v1586_v40 = vcombine.high %v1561_v30, %v1577_v32  ;;  %v1587_v41 = vcombine.low %v1568_v31, %v1584_v33  ;;  %v1588_v42 = vcombine.high %v1568_v31, %v1584_v33 }
 0x2c5   : > { %v4997_v43 = vpack.c.bf16 %v1381_v36, %v1381_v36  ;;  %v5002_v46 = vpack.c.bf16 %v1382_v39, %v1382_v39  ;;  %v5007_v17 = vpack.c.bf16 %v1383_v1, %v1383_v1  ;;  %v5012_v47 = vpack.c.bf16 %v1384_v34, %v1384_v34  ;;  %v1699_v24 = vpop.permute.xlu1 %1698 }
 0x2c6   : > { %v5000_v49 = vpack.c.bf16 %v1585_v38, %v1585_v38  ;;  %v5005_v50 = vpack.c.bf16 %v1586_v40, %v1586_v40  ;;  %v5010_v51 = vpack.c.bf16 %v1587_v41, %v1587_v41  ;;  %v5015_v52 = vpack.c.bf16 %v1588_v42, %v1588_v42  ;;  %v5939_v15 = vpop.permute.xlu0 %1700 }
 0x2c7   : > { %1675 = vst.msk [vmem:[#allocation2 + $0x4] sm:$0xf] %vm1673_vm2, %v4997_v43  ;;  %1680 = vst.msk [vmem:[#allocation2 + $0x18] sm:$0xf] %vm1673_vm2, %v5002_v46  ;;  %v1145_v53 = vcombine.low %v5851_v25, %v5876_v44  ;;  %v1146_v54 = vcombine.high %v5851_v25, %v5876_v44  ;;  %v1161_v57 = vcombine.low %v5854_v35, %v5879_v45 }
 0x2c8   : > { %1685 = vst.msk [vmem:[#allocation2 + $0x2c] sm:$0xf] %vm1673_vm2, %v5007_v17  ;;  %1690 = vst.msk [vmem:[#allocation2 + $0x40] sm:$0xf] %vm1673_vm2, %v5012_v47  ;;  %v1162_v58 = vcombine.high %v5854_v35, %v5879_v45 }
 0x2c9   : > { %1678 = vst.msk [vmem:[#allocation2 + $0x10] sm:$0xf] %vm1673_vm2, %v5000_v49  ;;  %1683 = vst.msk [vmem:[#allocation2 + $0x24] sm:$0xf] %vm1673_vm2, %v5005_v50  ;;  %v1153_v59 = vrot.slane %v1145_v53, %v5779_v56  ;;  %v1160_v60 = vrot.slane %v1146_v54, %v5779_v56  ;;  %v1169_v25 = vrot.slane %v1161_v57, %v5779_v56  ;;  %v5941_v37 = vpop.permute.xlu1 %1702 }
 0x2ca   : > { %1688 = vst.msk [vmem:[#allocation2 + $0x38] sm:$0xf] %vm1673_vm2, %v5010_v51  ;;  %1693 = vst.msk [vmem:[#allocation2 + $0x4c] sm:$0xf] %vm1673_vm2, %v5015_v52  ;;  %v1176_v44 = vrot.slane %v1162_v58, %v5779_v56 }
 0x2cb   : > { %v1453_v61 = vcombine.low %v1153_v59, %v1160_v60  ;;  %v4855_v62 = vcombine.high %v1153_v59, %v1160_v60 }
 0x2cc   : > { %v1469_v63 = vcombine.low %v1169_v25, %v1176_v44  ;;  %v4856_v35 = vcombine.high %v1169_v25, %v1176_v44 }
 0x2cd   : > { %v1460_v45 = vrot.slane %v1453_v61, %v5775_v48  ;;  %v1468_v2 = vrot.slane %v4855_v62, %v5775_v48 }
 0x2ce   : > { %v1476_v55 = vrot.slane %v1469_v63, %v5775_v48  ;;  %v1484_v3 = vrot.slane %v4856_v35, %v5775_v48 }
 0x2cf   : > { %v1485_v4 = vcombine.low %v1460_v45, %v1468_v2  ;;  %v1486_v5 = vcombine.high %v1460_v45, %v1468_v2 }
 0x2d0   : > { %v1501_v6 = vcombine.low %v1476_v55, %v1484_v3  ;;  %v1502_v7 = vcombine.high %v1476_v55, %v1484_v3 }
 0x2d1   : > { %v1493_v8 = vrot.slane %v1485_v4, %v5779_v56  ;;  %v1500_v9 = vrot.slane %v1486_v5, %v5779_v56 }
 0x2d2   : > { %v1509_v10 = vrot.slane %v1501_v6, %v5779_v56  ;;  %v1516_v11 = vrot.slane %v1502_v7, %v5779_v56 }
 0x2d4   : > { %v1517_v12 = vcombine.low %v1493_v8, %v1509_v10  ;;  %v1518_v13 = vcombine.high %v1493_v8, %v1509_v10  ;;  %v1519_v14 = vcombine.low %v1500_v9, %v1516_v11  ;;  %v1520_v18 = vcombine.high %v1500_v9, %v1516_v11 }
 0x2d6   : > { %v4999_v16 = vpack.c.bf16 %v1517_v12, %v1517_v12  ;;  %v5004_v19 = vpack.c.bf16 %v1518_v13, %v1518_v13  ;;  %v5009_v20 = vpack.c.bf16 %v1519_v14, %v1519_v14  ;;  %v5014_v21 = vpack.c.bf16 %v1520_v18, %v1520_v18 }
 0x2d8   : > { %1677 = vst.msk [vmem:[#allocation2 + $0xc] sm:$0xf] %vm1673_vm2, %v4999_v16  ;;  %1682 = vst.msk [vmem:[#allocation2 + $0x20] sm:$0xf] %vm1673_vm2, %v5004_v19 }
 0x2d9   : > { %1687 = vst.msk [vmem:[#allocation2 + $0x34] sm:$0xf] %vm1673_vm2, %v5009_v20  ;;  %1692 = vst.msk [vmem:[#allocation2 + $0x48] sm:$0xf] %vm1673_vm2, %v5014_v21 }
 0x308   : > { %v1705_v26 = vpop.permute.xlu0 %1704  ;;  %v1715_v27 = vpop.permute.xlu1 %1714 }
 0x309   : > { %v1754_v30 = vcombine.low %v1695_v22, %v1715_v27  ;;  %v1755_v31 = vcombine.high %v1695_v22, %v1715_v27 }
 0x30b   : > { %v1762_v39 = vrot.slane %v1754_v30, %v5775_v48  ;;  %v1769_v1 = vrot.slane %v1755_v31, %v5775_v48 }
 0x30c   : > { %v1709_v28 = vpop.permute.xlu0 %1708  ;;  %v1719_v29 = vpop.permute.xlu1 %1718 }
 0x30d   : > { %v1890_v41 = vcombine.low %v1699_v24, %v1719_v29  ;;  %v1891_v42 = vcombine.high %v1699_v24, %v1719_v29 }
 0x30f   : > { %v1898_v58 = vrot.slane %v1890_v41, %v5775_v48  ;;  %v1905_v59 = vrot.slane %v1891_v42, %v5775_v48 }
 0x310   : > { %v1725_v32 = vpop.permute.xlu0 %1724 }
 0x311   : > { %v1770_v33 = vcombine.low %v1705_v26, %v1725_v32  ;;  %v1771_v36 = vcombine.high %v1705_v26, %v1725_v32  ;;  %v5947_v40 = vpop.permute.xlu1 %1706 }
 0x313   : > { %v1778_v34 = vrot.slane %v1770_v33, %v5775_v48  ;;  %v1785_v38 = vrot.slane %v1771_v36, %v5775_v48 }
 0x314   : > { %v1729_v43 = vpop.permute.xlu0 %1728 }
 0x315   : > { %v1786_v46 = vcombine.low %v1762_v39, %v1778_v34  ;;  %v1787_v17 = vcombine.high %v1762_v39, %v1778_v34  ;;  %v1802_v47 = vcombine.low %v1769_v1, %v1785_v38  ;;  %v1803_v49 = vcombine.high %v1769_v1, %v1785_v38  ;;  %v5957_v35 = vpop.permute.xlu1 %1710 }
 0x316   : > { %v1906_v50 = vcombine.low %v1709_v28, %v1729_v43  ;;  %v1907_v51 = vcombine.high %v1709_v28, %v1729_v43 }
 0x317   : > { %v1794_v52 = vrot.slane %v1786_v46, %v5779_v56  ;;  %v1801_v53 = vrot.slane %v1787_v17, %v5779_v56  ;;  %v1810_v54 = vrot.slane %v1802_v47, %v5779_v56  ;;  %v1817_v57 = vrot.slane %v1803_v49, %v5779_v56 }
 0x318   : > { %v1914_v60 = vrot.slane %v1906_v50, %v5775_v48  ;;  %v1921_v25 = vrot.slane %v1907_v51, %v5775_v48  ;;  %v5959_v45 = vpop.permute.xlu0 %1716 }
 0x319   : > { %v2094_v44 = vcombine.low %v1794_v52, %v1801_v53  ;;  %v4879_v61 = vcombine.high %v1794_v52, %v1801_v53  ;;  %v2110_v62 = vcombine.low %v1810_v54, %v1817_v57  ;;  %v4880_v63 = vcombine.high %v1810_v54, %v1817_v57  ;;  %v1727_v29 = vpop.permute.xlu1 %1726 }
 0x31a   : > { %v1922_v2 = vcombine.low %v1898_v58, %v1914_v60  ;;  %v1923_v55 = vcombine.high %v1898_v58, %v1914_v60  ;;  %v1938_v3 = vcombine.low %v1905_v59, %v1921_v25  ;;  %v1939_v4 = vcombine.high %v1905_v59, %v1921_v25 }
 0x31b   : > { %v2101_v5 = vrot.slane %v2094_v44, %v5775_v48  ;;  %v2109_v6 = vrot.slane %v4879_v61, %v5775_v48  ;;  %v2117_v7 = vrot.slane %v2110_v62, %v5775_v48  ;;  %v2125_v8 = vrot.slane %v4880_v63, %v5775_v48 }
 0x31c   : > { %v1930_v9 = vrot.slane %v1922_v2, %v5779_v56  ;;  %v1937_v10 = vrot.slane %v1923_v55, %v5779_v56  ;;  %v1946_v11 = vrot.slane %v1938_v3, %v5779_v56  ;;  %v1953_v12 = vrot.slane %v1939_v4, %v5779_v56  ;;  %v5973_v30 = vpop.permute.xlu0 %1720 }
 0x31d   : > { %v2126_v13 = vcombine.low %v2101_v5, %v2109_v6  ;;  %v2127_v14 = vcombine.high %v2101_v5, %v2109_v6  ;;  %v2142_v18 = vcombine.low %v2117_v7, %v2125_v8  ;;  %v2143_v16 = vcombine.high %v2117_v7, %v2125_v8  ;;  %v1723_v25 = vpop.permute.xlu1 %1722 }
 0x31e   : > { %v2230_v19 = vcombine.low %v1930_v9, %v1937_v10  ;;  %v4883_v20 = vcombine.high %v1930_v9, %v1937_v10  ;;  %v2246_v21 = vcombine.low %v1946_v11, %v1953_v12  ;;  %v4884_v22 = vcombine.high %v1946_v11, %v1953_v12 }
 0x31f   : > { %v2134_v24 = vrot.slane %v2126_v13, %v5779_v56  ;;  %v2141_v26 = vrot.slane %v2127_v14, %v5779_v56  ;;  %v2150_v27 = vrot.slane %v2142_v18, %v5779_v56  ;;  %v2157_v28 = vrot.slane %v2143_v16, %v5779_v56 }
 0x320   : > { %v2237_v31 = vrot.slane %v2230_v19, %v5775_v48  ;;  %v2245_v32 = vrot.slane %v4883_v20, %v5775_v48  ;;  %v2253_v33 = vrot.slane %v2246_v21, %v5775_v48  ;;  %v2261_v36 = vrot.slane %v4884_v22, %v5775_v48  ;;  %v1713_v44 = vpop.permute.xlu0 %1712 }
 0x321   : > { %v2158_v39 = vcombine.low %v2134_v24, %v2150_v27  ;;  %v2159_v1 = vcombine.high %v2134_v24, %v2150_v27  ;;  %v2160_v34 = vcombine.low %v2141_v26, %v2157_v28  ;;  %v2161_v38 = vcombine.high %v2141_v26, %v2157_v28  ;;  %v1731_v21 = vpop.permute.xlu1 %1730 }
 0x322   : > { %v2262_v41 = vcombine.low %v2237_v31, %v2245_v32  ;;  %v2263_v42 = vcombine.high %v2237_v31, %v2245_v32  ;;  %v2278_v43 = vcombine.low %v2253_v33, %v2261_v36  ;;  %v2279_v46 = vcombine.high %v2253_v33, %v2261_v36 }
 0x323   : > { %v5016_v17 = vpack.c.bf16 %v2158_v39, %v2158_v39  ;;  %v5021_v47 = vpack.c.bf16 %v2159_v1, %v2159_v1  ;;  %v5026_v49 = vpack.c.bf16 %v2160_v34, %v2160_v34  ;;  %v5031_v50 = vpack.c.bf16 %v2161_v38, %v2161_v38 }
 0x324   : > { %v2270_v51 = vrot.slane %v2262_v41, %v5779_v56  ;;  %v2277_v52 = vrot.slane %v2263_v42, %v5779_v56  ;;  %v2286_v53 = vrot.slane %v2278_v43, %v5779_v56  ;;  %v2293_v54 = vrot.slane %v2279_v46, %v5779_v56  ;;  %v1733_v22 = vpop.permute.xlu0 %1732 }
 0x325   : > { %2518 = vst.msk [vmem:[#allocation3] sm:$0xf] %vm1673_vm2, %v5016_v17  ;;  %2523 = vst.msk [vmem:[#allocation3 + $0x14] sm:$0xf] %vm1673_vm2, %v5021_v47  ;;  %v1822_v57 = vcombine.low %v5937_v23, %v5959_v45  ;;  %v1823_v58 = vcombine.high %v5937_v23, %v5959_v45  ;;  %v1838_v59 = vcombine.low %v5947_v40, %v1727_v29 }
 0x326   : > { %2528 = vst.msk [vmem:[#allocation3 + $0x28] sm:$0xf] %vm1673_vm2, %v5026_v49  ;;  %2533 = vst.msk [vmem:[#allocation3 + $0x3c] sm:$0xf] %vm1673_vm2, %v5031_v50  ;;  %v1839_v60 = vcombine.high %v5947_v40, %v1727_v29  ;;  %v2294_v61 = vcombine.low %v2270_v51, %v2286_v53  ;;  %v2295_v62 = vcombine.high %v2270_v51, %v2286_v53 }
 0x327   : > { %v2296_v63 = vcombine.low %v2277_v52, %v2293_v54  ;;  %v2297_v2 = vcombine.high %v2277_v52, %v2293_v54  ;;  %v1830_v55 = vrot.slane %v1822_v57, %v5775_v48  ;;  %v1837_v3 = vrot.slane %v1823_v58, %v5775_v48 }
 0x328   : > { %v1846_v4 = vrot.slane %v1838_v59, %v5775_v48  ;;  %v1853_v5 = vrot.slane %v1839_v60, %v5775_v48  ;;  %v5018_v6 = vpack.c.bf16 %v2294_v61, %v2294_v61  ;;  %v5023_v23 = vpack.c.bf16 %v2295_v62, %v2295_v62 }
 0x329   : > { %v5028_v45 = vpack.c.bf16 %v2296_v63, %v2296_v63  ;;  %v5033_v7 = vpack.c.bf16 %v2297_v2, %v2297_v2  ;;  %v1958_v11 = vcombine.low %v5939_v15, %v5973_v30  ;;  %v1959_v12 = vcombine.high %v5939_v15, %v5973_v30 }
 0x32a   : > { %v1854_v8 = vcombine.low %v1830_v55, %v1846_v4  ;;  %v1855_v40 = vcombine.high %v1830_v55, %v1846_v4  ;;  %v1870_v9 = vcombine.low %v1837_v3, %v1853_v5  ;;  %v1871_v10 = vcombine.high %v1837_v3, %v1853_v5  ;;  %2520 = vst.msk [vmem:[#allocation3 + $0x8] sm:$0xf] %vm1673_vm2, %v5018_v6 }
 0x32b   : > { %2525 = vst.msk [vmem:[#allocation3 + $0x1c] sm:$0xf] %vm1673_vm2, %v5023_v23  ;;  %2530 = vst.msk [vmem:[#allocation3 + $0x30] sm:$0xf] %vm1673_vm2, %v5028_v45  ;;  %v2026_v13 = vcombine.low %v5941_v37, %v1723_v25  ;;  %v2027_v14 = vcombine.high %v5941_v37, %v1723_v25  ;;  %v1966_v24 = vrot.slane %v1958_v11, %v5775_v48 }
 0x32c   : > { %2535 = vst.msk [vmem:[#allocation3 + $0x44] sm:$0xf] %vm1673_vm2, %v5033_v7  ;;  %v1862_v18 = vrot.slane %v1854_v8, %v5779_v56  ;;  %v1869_v16 = vrot.slane %v1855_v40, %v5779_v56  ;;  %v1878_v19 = vrot.slane %v1870_v9, %v5779_v56  ;;  %v1885_v20 = vrot.slane %v1871_v10, %v5779_v56 }
 0x32d   : > { %v1973_v26 = vrot.slane %v1959_v12, %v5775_v48  ;;  %v6014_v15 = vrot.slane %v2026_v13, %v5775_v48  ;;  %v6017_v27 = vrot.slane %v2027_v14, %v5775_v48  ;;  %v1974_v31 = vcombine.low %v5957_v35, %v1731_v21 }
 0x32e   : > { %v2162_v37 = vcombine.low %v1862_v18, %v1869_v16  ;;  %v4881_v28 = vcombine.high %v1862_v18, %v1869_v16  ;;  %v2178_v29 = vcombine.low %v1878_v19, %v1885_v20  ;;  %v4882_v30 = vcombine.high %v1878_v19, %v1885_v20 }
 0x32f   : > { %v1975_v32 = vcombine.high %v5957_v35, %v1731_v21  ;;  %v2042_v33 = vcombine.low %v1713_v44, %v1733_v22  ;;  %v2043_v36 = vcombine.high %v1713_v44, %v1733_v22  ;;  %v1982_v41 = vrot.slane %v1974_v31, %v5775_v48 }
 0x330   : > { %v2169_v39 = vrot.slane %v2162_v37, %v5775_v48  ;;  %v2177_v1 = vrot.slane %v4881_v28, %v5775_v48  ;;  %v2185_v34 = vrot.slane %v2178_v29, %v5775_v48  ;;  %v2193_v38 = vrot.slane %v4882_v30, %v5775_v48 }
 0x331   : > { %v1989_v42 = vrot.slane %v1975_v32, %v5775_v48  ;;  %v2050_v43 = vrot.slane %v2042_v33, %v5775_v48  ;;  %v2057_v46 = vrot.slane %v2043_v36, %v5775_v48  ;;  %v1990_v50 = vcombine.low %v1966_v24, %v1982_v41 }
 0x332   : > { %v2194_v17 = vcombine.low %v2169_v39, %v2177_v1  ;;  %v2195_v35 = vcombine.high %v2169_v39, %v2177_v1  ;;  %v2210_v47 = vcombine.low %v2185_v34, %v2193_v38  ;;  %v2211_v49 = vcombine.high %v2185_v34, %v2193_v38 }
 0x333   : > { %v1991_v51 = vcombine.high %v1966_v24, %v1982_v41  ;;  %v2006_v52 = vcombine.low %v1973_v26, %v1989_v42  ;;  %v2007_v53 = vcombine.high %v1973_v26, %v1989_v42  ;;  %v1998_v60 = vrot.slane %v1990_v50, %v5779_v56 }
 0x334   : > { %v2202_v54 = vrot.slane %v2194_v17, %v5779_v56  ;;  %v2209_v57 = vrot.slane %v2195_v35, %v5779_v56  ;;  %v2218_v58 = vrot.slane %v2210_v47, %v5779_v56  ;;  %v2225_v59 = vrot.slane %v2211_v49, %v5779_v56 }
 0x335   : > { %v2005_v25 = vrot.slane %v1991_v51, %v5779_v56  ;;  %v2014_v44 = vrot.slane %v2006_v52, %v5779_v56  ;;  %v2021_v61 = vrot.slane %v2007_v53, %v5779_v56  ;;  %v2058_v12 = vcombine.low %v6014_v15, %v2050_v43 }
 0x336   : > { %v2226_v62 = vcombine.low %v2202_v54, %v2218_v58  ;;  %v2227_v63 = vcombine.high %v2202_v54, %v2218_v58  ;;  %v2228_v2 = vcombine.low %v2209_v57, %v2225_v59  ;;  %v2229_v55 = vcombine.high %v2209_v57, %v2225_v59 }
 0x337   : > { %v2298_v3 = vcombine.low %v1998_v60, %v2005_v25  ;;  %v4885_v4 = vcombine.high %v1998_v60, %v2005_v25  ;;  %v2314_v5 = vcombine.low %v2014_v44, %v2021_v61  ;;  %v4886_v6 = vcombine.high %v2014_v44, %v2021_v61 }
 0x338   : > { %v5017_v23 = vpack.c.bf16 %v2226_v62, %v2226_v62  ;;  %v5022_v45 = vpack.c.bf16 %v2227_v63, %v2227_v63  ;;  %v5027_v7 = vpack.c.bf16 %v2228_v2, %v2228_v2  ;;  %v5032_v8 = vpack.c.bf16 %v2229_v55, %v2229_v55 }
 0x339   : > { %v2305_v40 = vrot.slane %v2298_v3, %v5775_v48  ;;  %v2313_v9 = vrot.slane %v4885_v4, %v5775_v48  ;;  %v2321_v10 = vrot.slane %v2314_v5, %v5775_v48  ;;  %v2329_v11 = vrot.slane %v4886_v6, %v5775_v48 }
 0x33a   : > { %2519 = vst.msk [vmem:[#allocation3 + $0x4] sm:$0xf] %vm1673_vm2, %v5017_v23  ;;  %2524 = vst.msk [vmem:[#allocation3 + $0x18] sm:$0xf] %vm1673_vm2, %v5022_v45  ;;  %v2059_v13 = vcombine.high %v6014_v15, %v2050_v43  ;;  %v2074_v14 = vcombine.low %v6017_v27, %v2057_v46  ;;  %v2075_v18 = vcombine.high %v6017_v27, %v2057_v46 }
 0x33b   : > { %2529 = vst.msk [vmem:[#allocation3 + $0x2c] sm:$0xf] %vm1673_vm2, %v5027_v7  ;;  %2534 = vst.msk [vmem:[#allocation3 + $0x40] sm:$0xf] %vm1673_vm2, %v5032_v8  ;;  %v2330_v16 = vcombine.low %v2305_v40, %v2313_v9  ;;  %v2331_v19 = vcombine.high %v2305_v40, %v2313_v9  ;;  %v2346_v20 = vcombine.low %v2321_v10, %v2329_v11 }
 0x33c   : > { %v2347_v21 = vcombine.high %v2321_v10, %v2329_v11  ;;  %v2066_v22 = vrot.slane %v2058_v12, %v5779_v56  ;;  %v2073_v24 = vrot.slane %v2059_v13, %v5779_v56  ;;  %v2082_v26 = vrot.slane %v2074_v14, %v5779_v56 }
 0x33d   : > { %v2089_v37 = vrot.slane %v2075_v18, %v5779_v56  ;;  %v2338_v28 = vrot.slane %v2330_v16, %v5779_v56  ;;  %v2345_v15 = vrot.slane %v2331_v19, %v5779_v56  ;;  %v2354_v29 = vrot.slane %v2346_v20, %v5779_v56 }
 0x33e   : > { %v2361_v27 = vrot.slane %v2347_v21, %v5779_v56  ;;  %v2366_v30 = vcombine.low %v2066_v22, %v2073_v24  ;;  %v4887_v31 = vcombine.high %v2066_v22, %v2073_v24 }
 0x33f   : > { %v2382_v32 = vcombine.low %v2082_v26, %v2089_v37  ;;  %v4888_v33 = vcombine.high %v2082_v26, %v2089_v37  ;;  %v2362_v36 = vcombine.low %v2338_v28, %v2354_v29  ;;  %v2363_v39 = vcombine.high %v2338_v28, %v2354_v29 }
 0x340   : > { %v2364_v1 = vcombine.low %v2345_v15, %v2361_v27  ;;  %v2365_v34 = vcombine.high %v2345_v15, %v2361_v27  ;;  %v2373_v38 = vrot.slane %v2366_v30, %v5775_v48  ;;  %v2381_v41 = vrot.slane %v4887_v31, %v5775_v48 }
 0x341   : > { %v2389_v42 = vrot.slane %v2382_v32, %v5775_v48  ;;  %v2397_v43 = vrot.slane %v4888_v33, %v5775_v48  ;;  %v5019_v46 = vpack.c.bf16 %v2362_v36, %v2362_v36  ;;  %v5024_v17 = vpack.c.bf16 %v2363_v39, %v2363_v39 }
 0x342   : > { %v5029_v35 = vpack.c.bf16 %v2364_v1, %v2364_v1  ;;  %v5034_v47 = vpack.c.bf16 %v2365_v34, %v2365_v34  ;;  %v2398_v49 = vcombine.low %v2373_v38, %v2381_v41  ;;  %v2399_v50 = vcombine.high %v2373_v38, %v2381_v41 }
 0x343   : > { %v2414_v51 = vcombine.low %v2389_v42, %v2397_v43  ;;  %v2415_v52 = vcombine.high %v2389_v42, %v2397_v43  ;;  %2521 = vst.msk [vmem:[#allocation3 + $0xc] sm:$0xf] %vm1673_vm2, %v5019_v46  ;;  %2526 = vst.msk [vmem:[#allocation3 + $0x20] sm:$0xf] %vm1673_vm2, %v5024_v17 }
 0x344   : > { %2531 = vst.msk [vmem:[#allocation3 + $0x34] sm:$0xf] %vm1673_vm2, %v5029_v35  ;;  %2536 = vst.msk [vmem:[#allocation3 + $0x48] sm:$0xf] %vm1673_vm2, %v5034_v47  ;;  %v2406_v53 = vrot.slane %v2398_v49, %v5779_v56  ;;  %v2413_v48 = vrot.slane %v2399_v50, %v5779_v56 }
 0x345   : > { %v2422_v54 = vrot.slane %v2414_v51, %v5779_v56  ;;  %v2429_v57 = vrot.slane %v2415_v52, %v5779_v56 }
 0x347   : > { %v2430_v58 = vcombine.low %v2406_v53, %v2422_v54  ;;  %v2431_v59 = vcombine.high %v2406_v53, %v2422_v54  ;;  %v2432_v60 = vcombine.low %v2413_v48, %v2429_v57  ;;  %v2433_v25 = vcombine.high %v2413_v48, %v2429_v57 }
 0x349   : > { %v5020_v44 = vpack.c.bf16 %v2430_v58, %v2430_v58  ;;  %v5025_v61 = vpack.c.bf16 %v2431_v59, %v2431_v59  ;;  %v5030_v62 = vpack.c.bf16 %v2432_v60, %v2432_v60  ;;  %v5035_v63 = vpack.c.bf16 %v2433_v25, %v2433_v25 }
 0x34b   : > { %2522 = vst.msk [vmem:[#allocation3 + $0x10] sm:$0xf] %vm1673_vm2, %v5020_v44  ;;  %2527 = vst.msk [vmem:[#allocation3 + $0x24] sm:$0xf] %vm1673_vm2, %v5025_v61 }
 0x34c   : > { %2532 = vst.msk [vmem:[#allocation3 + $0x38] sm:$0xf] %vm1673_vm2, %v5030_v62  ;;  %2537 = vst.msk [vmem:[#allocation3 + $0x4c] sm:$0xf] %vm1673_vm2, %v5035_v63 }
 0x34d PF: > { %v6074_v2 = vld [vmem:[%s5684_s14] sm:$0xff]  ;;  %vm2539_vm3 = vcmask 261120   ;;  %v5393_v23 = vld [vmem:[%s6467_s5 + $0x8] sm:$0xff]   ;;  %v5529_v45 = vmov 0.0   ;;  %vm5530_vm4 = vmmov 0   ;;  %v2555_v10 = vlaneseq  ;;  %s5531_s3 = smov 104  }
 0x34e   : > { %v2540_v56 = vsel %vm2539_vm3, %v6074_v2, 0.0  ;;  %5129 = vmatprep.subr.bf16.mxu0 %v5529_v45  ;;  %5133 = vmatprep.mubr.msk.bf16.mxu0 %vm5530_vm4, %v5529_v45  ;;  %v5394_v7 = vld [vmem:[%s6467_s5] sm:$0xff]   ;;  %v6097_v12 = vadd.f32 1.0, %v5679_v0  ;;  %v5395_v26 = vld [vmem:[#allocation2 + $0x10] ss:$0 sps:$4 sm:$0xff]   ;;  %vm2836_vm5 = vcmask 64512  }
 0x34f   : > { %2541 = vadd.xlane.f32.xlu0 %v2540_v56  ;;  %5130 = vmatpush3.bf16.msra.mxu0 %v5393_v23  ;;  %v6094_v11 = vshrl.u32 %v2555_v10, 7  ;;  %v5396_v37 = vld [vmem:[#allocation2 + $0x24] ss:$0 sps:$4 sm:$0xff]   ;;  %v2847_v28 = vsel %vm2836_vm5, %v5395_v26, 0  ;;  %v5397_v29 = vld [vmem:[#allocation2 + $0x8] sm:$0xff]   ;;  %v5398_v27 = vld [vmem:[#allocation2 + $0x1c] sm:$0xff]  }
 0x350   : > { %5137 = vmatprep.subr.bf16.mxu1 %v5529_v45  ;;  %5131 = vmatprep.subr.bf16.mxu0 %v5529_v45  ;;  %v2912_v15 = vsel %vm2836_vm5, %v5396_v37, 0  ;;  %v4909_v30 = vld [vmem:[%s6468_s6] ss:$0 sm:$0xff]  ;;  %v2844_v31 = vsel %vm2836_vm5, %v5397_v29, 0  ;;  %v2909_v32 = vsel %vm2836_vm5, %v5398_v27, 0  ;;  %s5532_s26 = smov 120  }
 0x351   : > { %5143 = vmatprep.mubr.msk.bf16.mxu1 %vm5530_vm4, %v5529_v45  ;;  %v2557_v13 = vsub.s32 1, %v6094_v11  ;;  %v2562_v14 = vsub.s32 0, %v6094_v11  ;;  %5138 = vmatpush3.bf16.xpose.msra.mxu1 %v2847_v28  ;;  %v5399_v38 = vld [vmem:[#allocation2] sm:$0xff]   ;;  %v5400_v41 = vld [vmem:[#allocation2 + $0x14] sm:$0xff]   ;;  %s5533_s27 = smov 112   ;;  %vm3084_vm6 = vcmask 326656  }
 0x352   : > { %5139 = vmatprep.subr.bf16.mxu1 %v5529_v45  ;;  %v2841_v43 = vsel %vm2836_vm5, %v5399_v38, 0  ;;  %v2906_v46 = vsel %vm2836_vm5, %v5400_v41, 0  ;;  %v5534_v17 = vmov 1983009808   ;;  %v5535_v47 = vmov 1934713408  }
 0x353   : > { %5132 = vmatpush3.bf16.msra.mxu0 %v5394_v7  ;;  %v2558_v18 = vrot.slane %v6097_v12, %v2557_v13  ;;  %v2563_v20 = vrot.slane %v5679_v0, %v2562_v14  ;;  %v2686_v35 = vunpack.c.l.s4 %v5534_v17  ;;  %v2718_v49 = vunpack.c.l.s4 %v5535_v47  ;;  %v5402_v26 = vld [vmem:[#allocation2 + $0x4c] ss:$0 sps:$4 sm:$0xff]   ;;  %v5406_v38 = vld [vmem:[#allocation2 + $0x3c] sm:$0xff]   ;;  %s5536_s15 = smov 16   ;;  %s5537_s16 = smov 8  }
 0x354   : > { %5147 = vmatprep.subr.bf16.mxu0 %v5529_v45  ;;  %vm3151_vm7 = vcmask 1043456   ;;  %s5538_s17 = smov 24   ;;  %vm3527_vm8 = vcmask 130048   ;;  %vm3529_vm9 = vcmask 195584   ;;  %s6509_s25 = sld [smem:[#allocation12_spill]] }
 0x355   : > { %v2687_v50 = vunpack.c.0.s8 %v2686_v35  ;;  %v2719_v53 = vunpack.c.0.s8 %v2718_v49  ;;  %s6510_s0 = sld [smem:[#allocation13_spill]] }
 0x356   : > { %s6512_s29 = sld [smem:[#allocation14_spill]] }
 0x357   : > { %v6125_v48 = vsub.s32 %v2687_v50, %v6094_v11  ;;  %v6128_v25 = vsub.s32 %v2719_v53, %v6094_v11  ;;  %s6514_s13 = sld [smem:[#allocation16_spill]] }
 0x358   : > { %s6515_s1 = sld [smem:[#allocation18_spill]] }
 0x359   : > { %5140 = vmatpush3.bf16.xpose.msra.mxu1 %v2844_v31  ;;  %v5403_v31 = vld [vmem:[#allocation2 + $0x30] sm:$0xff]   ;;  %s6517_s14 = sld [smem:[#allocation17_spill]] }
 0x35a   : > { %5141 = vmatprep.subr.bf16.mxu1 %v5529_v45  ;;  %s6518_s28 = sld [smem:[#allocation19_spill]] }
 0x35b   : > { %s6511_s22 = smov %s6510_s0 }
 0x35e   : > { %s6516_s2 = smov %s6515_s1 }
 0x361   : > { %5142 = vmatpush3.bf16.xpose.msra.mxu1 %v2841_v43 }
 0x362   : > { %5157 = vmatprep.subr.bf16.mxu1 %v5529_v45 }
 0x3d8   : > { %v2542_v55 = vpop.xlane.xlu0 %2541 }
 0x3d9   : > { %v2544_v3 = vmul.f32 0.03125, %v2542_v55 }
 0x3db   : > { %v2545_v4 = vsub.f32 %v6074_v2, %v2544_v3 }
 0x3dd   : > { %v2546_v5 = vmul.f32 %v2545_v4, %v2545_v4 }
 0x3df   : > { %v2547_v6 = vsel %vm2539_vm3, %v2546_v5, 0.0 }
 0x3e0   : > { %2548 = vadd.xlane.f32.xlu0 %v2547_v6 }
 0x469   : > { %v2549_v8 = vpop.xlane.xlu0 %2548 }
 0x46a   : > { %v2550_v40 = vmul.f32 0.03125, %v2549_v8 }
 0x46c   : > { %v2551_v9 = vadd.f32 1e-06, %v2550_v40 }
 0x46e   : > { %5443 = vrsqrt.f32 %v2551_v9 }
 0x47b   : > { %v5444_v16 = vpop.eup %5443 }
 0x47c   : > { %v2553_v19 = vmul.f32 %v5444_v16, %v2545_v4 }
 0x47e   : > { %v2559_v21 = vmul.f32 %v2558_v18, %v2553_v19 }
 0x480   : > { %v2564_v22 = vadd.f32 %v2563_v20, %v2559_v21 }
 0x482   : > { %v2565_v24 = vpack.c.bf16 %v2564_v22, %v2564_v22 }
 0x484   : > { %5134 = vmatmul.mubr.msk.bf16.vlgmr.msra.gmra.mxu0 %vm2539_vm3, %v2565_v24  ;;  %v5401_v24 = vld [vmem:[#allocation2 + $0x38] ss:$0 sps:$4 sm:$0xff]  }
 0x485   : > { %5153 = vmatprep.mubr.msk.bf16.mxu0 %vm5530_vm4, %v5529_v45  ;;  %5148 = vmatpush3.bf16.xpose.msra.mxu0 %v2912_v15  ;;  %v2977_v27 = vsel %vm2836_vm5, %v5401_v24, 0 }
 0x486   : > { %5149 = vmatprep.subr.bf16.mxu0 %v5529_v45 }
 0x48d   : > { %5150 = vmatpush3.bf16.xpose.msra.mxu0 %v2909_v32  ;;  %v5404_v32 = vld [vmem:[#allocation2 + $0x44] sm:$0xff]  }
 0x48e   : > { %5151 = vmatprep.subr.bf16.mxu0 %v5529_v45 }
 0x495   : > { %5152 = vmatpush3.bf16.xpose.msra.mxu0 %v2906_v46 }
 0x496   : > { %5167 = vmatprep.subr.bf16.mxu0 %v5529_v45 }
 0x544   : > { %v2626_v33 = vpop.f32.mrf.mxu0 }
 0x545   : > { %v2627_v36 = vadd.f32 %v4909_v30, %v2626_v33  ;;  %v3042_v30 = vsel %vm2836_vm5, %v5402_v26, 0  ;;  %v2974_v33 = vsel %vm2836_vm5, %v5403_v31, 0 }
 0x546   : > { %v5135_v39 = vpop.f32.mrf.mxu0 }
 0x547   : > { %v2632_v1 = vmul.f32 0.35355338, %v2627_v36  ;;  %v3039_v36 = vsel %vm2836_vm5, %v5404_v32, 0 }
 0x548   : > { %v2629_v34 = vpop.f32.mrf.mxu0 }
 0x549   : > { %2680 = vrot.lane.b32.xlu0 %v2632_v1, %s5531_s3  ;;  %2674 = vrot.lane.b32.xlu1 %v2632_v1, %s5532_s26  ;;  %v5405_v34 = vld [vmem:[#allocation2 + $0x28] sm:$0xff]  }
 0x54a   : > { %v5136_v42 = vpop.f32.mrf.mxu0  ;;  %v2971_v41 = vsel %vm2836_vm5, %v5405_v34, 0  ;;  %v5416_v34 = vld [vmem:[#allocation3 + $0x28] sm:$0xff]  }
 0x54b   : > { %v3036_v42 = vsel %vm2836_vm5, %v5406_v38, 0 }
 0x54d   : > { %2677 = vrot.lane.b32.xlu1 %v2632_v1, %s5533_s27 }
 0x5bb   : > { %v2681_v51 = vpop.permute.xlu0 %2680  ;;  %v2675_v52 = vpop.permute.xlu1 %2674 }
 0x5bc   : > { %v2699_v54 = vcombine.low %v2675_v52, %v2681_v51  ;;  %v2700_v57 = vcombine.high %v2675_v52, %v2681_v51 }
 0x5be   : > { %v2707_v44 = vrot.slane %v2699_v54, %v6125_v48  ;;  %v2714_v61 = vrot.slane %v2700_v57, %v6125_v48 }
 0x5bf   : > { %v2678_v58 = vpop.permute.xlu1 %2677 }
 0x5c0   : > { %v2683_v59 = vcombine.low %v2632_v1, %v2678_v58  ;;  %v2684_v60 = vcombine.high %v2632_v1, %v2678_v58 }
 0x5c2   : > { %v2691_v62 = vrot.slane %v2683_v59, %v6125_v48  ;;  %v2698_v63 = vrot.slane %v2684_v60, %v6125_v48 }
 0x5c4   : > { %v2715_v56 = vcombine.low %v2691_v62, %v2707_v44  ;;  %v2716_v55 = vcombine.high %v2691_v62, %v2707_v44  ;;  %v2731_v3 = vcombine.low %v2698_v63, %v2714_v61  ;;  %v2732_v4 = vcombine.high %v2698_v63, %v2714_v61 }
 0x5c6   : > { %v2723_v5 = vrot.slane %v2715_v56, %v6128_v25  ;;  %v2730_v6 = vrot.slane %v2716_v55, %v6128_v25  ;;  %v2739_v23 = vrot.slane %v2731_v3, %v6128_v25  ;;  %v2746_v7 = vrot.slane %v2732_v4, %v6128_v25 }
 0x5c8   : > { %v2751_v8 = vcombine.low %v2723_v5, %v2730_v6  ;;  %v4913_v40 = vcombine.high %v2723_v5, %v2730_v6  ;;  %v2767_v9 = vcombine.low %v2739_v23, %v2746_v7  ;;  %v4914_v10 = vcombine.high %v2739_v23, %v2746_v7 }
 0x5ca   : > { %v2758_v13 = vrot.slane %v2751_v8, %v6125_v48  ;;  %v2766_v14 = vrot.slane %v4913_v40, %v6125_v48  ;;  %v2774_v18 = vrot.slane %v2767_v9, %v6125_v48  ;;  %v2782_v16 = vrot.slane %v4914_v10, %v6125_v48 }
 0x5cc   : > { %v2783_v19 = vcombine.low %v2758_v13, %v2766_v14  ;;  %v2799_v20 = vcombine.low %v2774_v18, %v2782_v16  ;;  %v2784_v39 = vcombine.high %v2758_v13, %v2766_v14  ;;  %v2800_v1 = vcombine.high %v2774_v18, %v2782_v16 }
 0x5ce   : > { %v2791_v21 = vrot.slane %v2783_v19, %v6128_v25  ;;  %v2807_v22 = vrot.slane %v2799_v20, %v6128_v25  ;;  %v2798_v43 = vrot.slane %v2784_v39, %v6128_v25  ;;  %v2814_v46 = vrot.slane %v2800_v1, %v6128_v25  ;;  %v5414_v1 = vld [vmem:[#allocation3 + $0x30] sm:$0xff]  }
 0x5d0   : > { %v2815_v37 = vcombine.low %v2791_v21, %v2807_v22  ;;  %v2816_v28 = vcombine.high %v2791_v21, %v2807_v22  ;;  %v2817_v17 = vcombine.low %v2798_v43, %v2814_v46  ;;  %v2818_v35 = vcombine.high %v2798_v43, %v2814_v46 }
 0x5d2   : > { %v2819_v15 = vpack.c.bf16 %v2815_v37, %v2815_v37  ;;  %v2820_v29 = vpack.c.bf16 %v2816_v28, %v2816_v28  ;;  %v2821_v47 = vpack.c.bf16 %v2817_v17, %v2817_v17  ;;  %v2822_v49 = vpack.c.bf16 %v2818_v35, %v2818_v35  ;;  %v5407_v28 = vld [vmem:[#allocation3 + $0x10] ss:$0 sps:$4 sm:$0xff]  }
 0x5d4   : > { %5144 = vmatmul.mubr.msk.bf16.vlgmr.msra.gmra.mxu1 %vm2836_vm5, %v2819_v15  ;;  %5154 = vmatmul.mubr.msk.bf16.vlgmr.msra.gmra.mxu0 %vm2836_vm5, %v2820_v29  ;;  %v3153_v15 = vsel %vm3151_vm7, %v5407_v28, 0  ;;  %v5408_v29 = vld [vmem:[#allocation3 + $0x8] sm:$0xff]  }
 0x5d5   : > { %5158 = vmatpush3.bf16.xpose.msra.mxu1 %v2977_v27  ;;  %5168 = vmatpush3.bf16.xpose.msra.mxu0 %v3042_v30  ;;  %v5409_v27 = vld [vmem:[#allocation3] sm:$0xff]  }
 0x5d6   : > { %5159 = vmatprep.subr.bf16.mxu1 %v5529_v45  ;;  %5169 = vmatprep.subr.bf16.mxu0 %v5529_v45 }
 0x5d7   : > { %5163 = vmatprep.mubr.msk.bf16.mxu1 %vm5530_vm4, %v5529_v45  ;;  %5173 = vmatprep.mubr.msk.bf16.mxu0 %vm5530_vm4, %v5529_v45 }
 0x5dd   : > { %5160 = vmatpush3.bf16.xpose.msra.mxu1 %v2974_v33  ;;  %5170 = vmatpush3.bf16.xpose.msra.mxu0 %v3039_v36  ;;  %v5413_v36 = vld [vmem:[#allocation3 + $0x38] ss:$0 sps:$4 sm:$0xff]  }
 0x5de   : > { %5161 = vmatprep.subr.bf16.mxu1 %v5529_v45  ;;  %5171 = vmatprep.subr.bf16.mxu0 %v5529_v45  ;;  %v3275_v39 = vsel %vm3151_vm7, %v5413_v36, 0  ;;  %v5420_v36 = vld [vmem:[%s6471_s9] sm:$0xff]  }
 0x5e5   : > { %5162 = vmatpush3.bf16.xpose.msra.mxu1 %v2971_v41  ;;  %5172 = vmatpush3.bf16.xpose.msra.mxu0 %v3036_v42  ;;  %v5410_v42 = vld [vmem:[#allocation3 + $0x24] ss:$0 sps:$4 sm:$0xff]  }
 0x5e6   : > { %5177 = vmatprep.subr.bf16.mxu0 %v5529_v45  ;;  %5197 = vmatprep.subr.bf16.mxu1 %v5529_v45  ;;  %v3214_v35 = vsel %vm3151_vm7, %v5410_v42, 0 }
 0x5ec   : > { %5164 = vmatmul.mubr.msk.bf16.vlgmr.msra.gmra.mxu1 %vm2836_vm5, %v2821_v47  ;;  %5174 = vmatmul.mubr.msk.bf16.vlgmr.msra.gmra.mxu0 %vm2836_vm5, %v2822_v49  ;;  %v5411_v47 = vld [vmem:[#allocation3 + $0x1c] sm:$0xff]  }
 0x5ed   : > { %5183 = vmatprep.mubr.msk.bf16.mxu0 %vm5530_vm4, %v5529_v45  ;;  %5203 = vmatprep.mubr.msk.bf16.mxu1 %vm5530_vm4, %v5529_v45 }
 0x5ee   : > { %5178 = vmatpush3.bf16.msra.mxu0 %v3153_v15  ;;  %5198 = vmatpush3.bf16.msra.mxu1 %v3275_v39 }
 0x5ef   : > { %5179 = vmatprep.subr.bf16.mxu0 %v5529_v45  ;;  %5199 = vmatprep.subr.bf16.mxu1 %v5529_v45 }
 0x5f2   : > { %5180 = vmatpush3.bf16.msra.mxu0 %v5408_v29  ;;  %5200 = vmatpush3.bf16.msra.mxu1 %v5414_v1 }
 0x5f3   : > { %5181 = vmatprep.subr.bf16.mxu0 %v5529_v45  ;;  %5201 = vmatprep.subr.bf16.mxu1 %v5529_v45 }
 0x5f6   : > { %5182 = vmatpush3.bf16.msra.mxu0 %v5409_v27  ;;  %5202 = vmatpush3.bf16.msra.mxu1 %v5416_v34 }
 0x5f7   : > { %5187 = vmatprep.subr.bf16.mxu0 %v5529_v45  ;;  %5217 = vmatprep.subr.bf16.mxu1 %v5529_v45 }
 0x694   : > { %v2883_v50 = vpop.f32.mrf.mxu1  ;;  %v2948_v51 = vpop.f32.mrf.mxu0 }
 0x695   : > { %v3085_v52 = vsel %vm3084_vm6, %v2883_v50, -inf  ;;  %v3088_v53 = vsel %vm3084_vm6, %v2948_v51, -inf }
 0x696   : > { %3086 = vmax.xlane.f32.xlu1 %v3085_v52  ;;  %v5145_v54 = vpop.f32.mrf.mxu1  ;;  %3089 = vmax.xlane.f32.xlu0 %v3088_v53  ;;  %v5155_v57 = vpop.f32.mrf.mxu0  ;;  %v5415_v53 = vld [vmem:[#allocation3 + $0x4c] ss:$0 sps:$4 sm:$0xff]  }
 0x698   : > { %v2886_v58 = vpop.f32.mrf.mxu1  ;;  %v2951_v59 = vpop.f32.mrf.mxu0 }
 0x699   : > { %v3336_v58 = vsel %vm3151_vm7, %v5415_v53, 0  ;;  %v5417_v59 = vld [vmem:[#allocation3 + $0x44] sm:$0xff]  }
 0x69a   : > { %v5146_v60 = vpop.f32.mrf.mxu1  ;;  %v5156_v44 = vpop.f32.mrf.mxu0 }
 0x69b   : > { %v5418_v60 = vld [vmem:[#allocation3 + $0x3c] sm:$0xff]  }
 0x6ac   : > { %v3013_v61 = vpop.f32.mrf.mxu1  ;;  %v3078_v62 = vpop.f32.mrf.mxu0 }
 0x6ad   : > { %v3091_v63 = vsel %vm3084_vm6, %v3013_v61, -inf  ;;  %v3094_v5 = vsel %vm3084_vm6, %v3078_v62, -inf }
 0x6ae   : > { %3092 = vmax.xlane.f32.xlu1 %v3091_v63  ;;  %v5165_v56 = vpop.f32.mrf.mxu1  ;;  %v5175_v55 = vpop.f32.mrf.mxu0 }
 0x6b0   : > { %v3016_v3 = vpop.f32.mrf.mxu1  ;;  %v3081_v4 = vpop.f32.mrf.mxu0 }
 0x6b1   : > { %v5419_v3 = vld [vmem:[%s6471_s9 + $0x8] sm:$0xff]  }
 0x6b2   : > { %v5166_v6 = vpop.f32.mrf.mxu1  ;;  %3095 = vmax.xlane.f32.xlu1 %v3094_v5  ;;  %v5176_v23 = vpop.f32.mrf.mxu0 }
 0x71f   : > { %v3087_v7 = vpop.xlane.xlu1 %3086  ;;  %v3090_v8 = vpop.xlane.xlu0 %3089 }
 0x720   : > { %v3097_v40 = vsub.f32 %v2883_v50, %v3087_v7  ;;  %v3098_v9 = vsub.f32 %v2948_v51, %v3090_v8  ;;  %v5412_v51 = vld [vmem:[#allocation3 + $0x14] sm:$0xff]  }
 0x722   : > { %v3101_v10 = vmul.f32 1.442695, %v3097_v40  ;;  %v3103_v13 = vmul.f32 1.442695, %v3098_v9 }
 0x724   : > { %5445 = vpow2.f32 %v3101_v10 }
 0x725   : > { %5447 = vpow2.f32 %v3103_v13 }
 0x731   : > { %v5446_v14 = vpop.eup %5445 }
 0x732   : > { %v3109_v18 = vsel %vm3084_vm6, %v5446_v14, 0.0  ;;  %v5448_v16 = vpop.eup %5447 }
 0x733   : > { %3110 = vadd.xlane.f32.xlu1 %v3109_v18  ;;  %v3112_v19 = vsel %vm3084_vm6, %v5448_v16, 0.0 }
 0x737   : > { %v3093_v20 = vpop.xlane.xlu1 %3092  ;;  %3113 = vadd.xlane.f32.xlu1 %v3112_v19 }
 0x738   : > { %v3099_v21 = vsub.f32 %v3013_v61, %v3093_v20 }
 0x73a   : > { %v3105_v22 = vmul.f32 1.442695, %v3099_v21 }
 0x73b   : > { %v3096_v24 = vpop.xlane.xlu1 %3095 }
 0x73c   : > { %5449 = vpow2.f32 %v3105_v22  ;;  %v3100_v26 = vsub.f32 %v3078_v62, %v3096_v24 }
 0x73e   : > { %v3107_v37 = vmul.f32 1.442695, %v3100_v26 }
 0x740   : > { %5451 = vpow2.f32 %v3107_v37 }
 0x749   : > { %v5450_v30 = vpop.eup %5449 }
 0x74a   : > { %v3115_v31 = vsel %vm3084_vm6, %v5450_v30, 0.0 }
 0x74b   : > { %3116 = vadd.xlane.f32.xlu1 %v3115_v31 }
 0x74d   : > { %v5452_v32 = vpop.eup %5451 }
 0x74e   : > { %v3118_v33 = vsel %vm3084_vm6, %v5452_v32, 0.0 }
 0x74f   : > { %3119 = vadd.xlane.f32.xlu0 %v3118_v33 }
 0x7bc   : > { %v3111_v38 = vpop.xlane.xlu1 %3110 }
 0x7bd   : > { %5453 = vrcp.f32 %v3111_v38 }
 0x7c0   : > { %v3114_v41 = vpop.xlane.xlu1 %3113 }
 0x7c1   : > { %5455 = vrcp.f32 %v3114_v41 }
 0x7ca   : > { %v5454_v43 = vpop.eup %5453 }
 0x7cb   : > { %v3125_v46 = vmul.f32 %v5454_v43, %v5446_v14 }
 0x7cd   : > { %v3129_v17 = vpack.c.bf16 %v3125_v46, %v3125_v46 }
 0x7ce   : > { %v5456_v49 = vpop.eup %5455 }
 0x7cf   : > { %5184 = vmatmul.mubr.msk.bf16.vlgmr.msra.gmra.mxu0 %vm3084_vm6, %v3129_v17  ;;  %v3126_v52 = vmul.f32 %v5456_v49, %v5448_v16 }
 0x7d0   : > { %5188 = vmatpush3.bf16.msra.mxu0 %v3214_v35  ;;  %5193 = vmatprep.mubr.msk.bf16.mxu0 %vm5530_vm4, %v5529_v45 }
 0x7d1   : > { %5189 = vmatprep.subr.bf16.mxu0 %v5529_v45  ;;  %v3130_v57 = vpack.c.bf16 %v3126_v52, %v3126_v52 }
 0x7d4   : > { %5190 = vmatpush3.bf16.msra.mxu0 %v5411_v47  ;;  %v3117_v50 = vpop.xlane.xlu1 %3116 }
 0x7d5   : > { %5457 = vrcp.f32 %v3117_v50  ;;  %5191 = vmatprep.subr.bf16.mxu0 %v5529_v45 }
 0x7d8   : > { %v3120_v54 = vpop.xlane.xlu0 %3119  ;;  %5192 = vmatpush3.bf16.msra.mxu0 %v5412_v51 }
 0x7d9   : > { %5459 = vrcp.f32 %v3120_v54  ;;  %5207 = vmatprep.subr.bf16.mxu0 %v5529_v45 }
 0x7db   : > { %5194 = vmatmul.mubr.msk.bf16.vlgmr.msra.gmra.mxu0 %vm3084_vm6, %v3130_v57 }
 0x7dc   : > { %5208 = vmatpush3.bf16.msra.mxu0 %v3336_v58  ;;  %5213 = vmatprep.mubr.msk.bf16.mxu0 %vm5530_vm4, %v5529_v45 }
 0x7dd   : > { %5209 = vmatprep.subr.bf16.mxu0 %v5529_v45 }
 0x7e0   : > { %5210 = vmatpush3.bf16.msra.mxu0 %v5417_v59 }
 0x7e1   : > { %5211 = vmatprep.subr.bf16.mxu0 %v5529_v45 }
 0x7e2   : > { %v5458_v44 = vpop.eup %5457 }
 0x7e3   : > { %v3127_v61 = vmul.f32 %v5458_v44, %v5450_v30 }
 0x7e4   : > { %5212 = vmatpush3.bf16.msra.mxu0 %v5418_v60 }
 0x7e5   : > { %v3131_v62 = vpack.c.bf16 %v3127_v61, %v3127_v61  ;;  %5225 = vmatprep.subr.bf16.mxu0 %v5529_v45 }
 0x7e6   : > { %v5460_v63 = vpop.eup %5459 }
 0x7e7   : > { %5204 = vmatmul.mubr.msk.bf16.vlgmr.msra.gmra.mxu1 %vm3084_vm6, %v3131_v62  ;;  %v3128_v56 = vmul.f32 %v5460_v63, %v5452_v32 }
 0x7e8   : > { %5221 = vmatprep.mubr.msk.bf16.mxu1 %vm5530_vm4, %v5529_v45  ;;  %5218 = vmatpush3.bf16.msra.mxu1 %v5419_v3 }
 0x7e9   : > { %v3132_v55 = vpack.c.bf16 %v3128_v56, %v3128_v56  ;;  %5219 = vmatprep.subr.bf16.mxu1 %v5529_v45 }
 0x7eb   : > { %5214 = vmatmul.mubr.msk.bf16.vlgmr.msra.gmra.mxu0 %vm3084_vm6, %v3132_v55 }
 0x7ec   : > { %5229 = vmatprep.mubr.msk.bf16.mxu0 %vm5530_vm4, %v5529_v45  ;;  %5220 = vmatpush3.bf16.msra.mxu1 %v5420_v36 }
 0x7ed   : > { %5233 = vmatprep.subr.bf16.mxu1 %v5529_v45 }
 0x88f   : > { %v3189_v4 = vpop.f32.mrf.mxu0 }
 0x891   : > { %v5185_v5 = vpop.f32.mrf.mxu0 }
 0x893   : > { %v3192_v6 = vpop.f32.mrf.mxu0 }
 0x895   : > { %v5186_v23 = vpop.f32.mrf.mxu0 }
 0x896   : > { %v5421_v23 = vld [vmem:[%s6473_s11 + $0x8] sm:$0xff]  }
 0x897   : > { %5226 = vmatpush3.bf16.msra.mxu0 %v5421_v23 }
 0x898   : > { %5227 = vmatprep.subr.bf16.mxu0 %v5529_v45 }
 0x89b   : > { %v3250_v7 = vpop.f32.mrf.mxu0 }
 0x89d   : > { %v5195_v8 = vpop.f32.mrf.mxu0 }
 0x89e   : > { %v3600_v8 = vsub.s32 2, %v6094_v11 }
 0x89f   : > { %v3253_v40 = vpop.f32.mrf.mxu0 }
 0x8a0   : > { %v4949_v40 = vld [vmem:[%s6472_s10] ss:$0 sm:$0xff] }
 0x8a1   : > { %v5196_v9 = vpop.f32.mrf.mxu0 }
 0x8a2   : > { %v3601_v9 = vrot.slane %v5679_v0, %v3600_v8 }
 0x8a7   : > { %v3311_v10 = vpop.f32.mrf.mxu1 }
 0x8a8   : > { %v3378_v14 = vcombine.low %v3189_v4, %v3311_v10  ;;  %v3379_v18 = vcombine.high %v3189_v4, %v3311_v10 }
 0x8a9   : > { %v5205_v13 = vpop.f32.mrf.mxu1 }
 0x8aa   : > { %v3386_v26 = vrot.slane %v3378_v14, %v6125_v48  ;;  %v3393_v37 = vrot.slane %v3379_v18, %v6125_v48 }
 0x8ab   : > { %v3314_v16 = vpop.f32.mrf.mxu1  ;;  %v3372_v19 = vpop.f32.mrf.mxu0 }
 0x8ac   : > { %v3394_v20 = vcombine.low %v3250_v7, %v3372_v19  ;;  %v3395_v21 = vcombine.high %v3250_v7, %v3372_v19  ;;  %v5422_v7 = vld [vmem:[%s6473_s11] sm:$0xff]  }
 0x8ad   : > { %v5206_v22 = vpop.f32.mrf.mxu1  ;;  %v5215_v24 = vpop.f32.mrf.mxu0  ;;  %5228 = vmatpush3.bf16.msra.mxu0 %v5422_v7 }
 0x8ae   : > { %v3402_v28 = vrot.slane %v3394_v20, %v6125_v48  ;;  %v3409_v15 = vrot.slane %v3395_v21, %v6125_v48  ;;  %5239 = vmatprep.subr.bf16.mxu0 %v5529_v45  ;;  %v4953_v22 = vld [vmem:[%s6474_s12] ss:$0 sm:$0xff] }
 0x8af   : > { %v3375_v29 = vpop.f32.mrf.mxu0 }
 0x8b0   : > { %v3410_v27 = vcombine.low %v3386_v26, %v3402_v28  ;;  %v3411_v30 = vcombine.high %v3386_v26, %v3402_v28  ;;  %v3426_v31 = vcombine.low %v3393_v37, %v3409_v15  ;;  %v3427_v32 = vcombine.high %v3393_v37, %v3409_v15  ;;  %v5423_v29 = vld [vmem:[%s6509_s25] sm:$0xff]  }
 0x8b1   : > { %v5216_v33 = vpop.f32.mrf.mxu0 }
 0x8b2   : > { %v3418_v39 = vrot.slane %v3410_v27, %v6128_v25  ;;  %v3425_v1 = vrot.slane %v3411_v30, %v6128_v25  ;;  %v3434_v34 = vrot.slane %v3426_v31, %v6128_v25  ;;  %v3441_v38 = vrot.slane %v3427_v32, %v6128_v25  ;;  %v5424_v27 = vld [vmem:[%s6509_s25 + $0x8] sm:$0xff]  }
 0x8b3   : > { %v3847_v30 = vsel %vm2836_vm5, %v5423_v29, 0  ;;  %v3898_v31 = vsel %vm2836_vm5, %v5424_v27, 0 }
 0x8b4   : > { %v3446_v41 = vcombine.low %v3418_v39, %v3425_v1  ;;  %v4947_v42 = vcombine.high %v3418_v39, %v3425_v1  ;;  %v3462_v43 = vcombine.low %v3434_v34, %v3441_v38  ;;  %v4948_v46 = vcombine.high %v3434_v34, %v3441_v38 }
 0x8b6   : > { %v3453_v17 = vrot.slane %v3446_v41, %v6125_v48  ;;  %v3461_v35 = vrot.slane %v4947_v42, %v6125_v48  ;;  %v3469_v47 = vrot.slane %v3462_v43, %v6125_v48  ;;  %v3477_v49 = vrot.slane %v4948_v46, %v6125_v48 }
 0x8b8   : > { %v3479_v50 = vcombine.high %v3453_v17, %v3461_v35  ;;  %v3495_v51 = vcombine.high %v3469_v47, %v3477_v49  ;;  %v3478_v52 = vcombine.low %v3453_v17, %v3461_v35  ;;  %v3494_v53 = vcombine.low %v3469_v47, %v3477_v49 }
 0x8ba   : > { %v3493_v54 = vrot.slane %v3479_v50, %v6128_v25  ;;  %v3509_v57 = vrot.slane %v3495_v51, %v6128_v25  ;;  %v3486_v58 = vrot.slane %v3478_v52, %v6128_v25  ;;  %v3502_v59 = vrot.slane %v3494_v53, %v6128_v25 }
 0x8bc   : > { %v3512_v60 = vcombine.low %v3493_v54, %v3509_v57  ;;  %v3511_v44 = vcombine.high %v3486_v58, %v3502_v59  ;;  %v3510_v61 = vcombine.low %v3486_v58, %v3502_v59  ;;  %v3513_v62 = vcombine.high %v3493_v54, %v3509_v57 }
 0x8be   : > { %3519 = vrot.lane.b32.xlu0 %v3512_v60, %s5536_s15  ;;  %3515 = vrot.lane.b32.xlu1 %v3511_v44, %s5537_s16 }
 0x8c2   : > { %3523 = vrot.lane.b32.xlu1 %v3513_v62, %s5538_s17 }
 0x930   : > { %v3516_v63 = vpop.permute.xlu1 %3515  ;;  %v3520_v56 = vpop.permute.xlu0 %3519 }
 0x931   : > { %v3526_v55 = vsel %vm2836_vm5, %v3510_v61, %v3516_v63 }
 0x932   : > { %v3528_v4 = vsel %vm3527_vm8, %v3526_v55, %v3520_v56  ;;  %v5425_v55 = vld [vmem:[%s6509_s25 + $0x10] sm:$0xff]  }
 0x934   : > { %v3524_v3 = vpop.permute.xlu1 %3523 }
 0x935   : > { %v3530_v5 = vsel %vm3529_vm9, %v3528_v4, %v3524_v3  ;;  %v5426_v3 = vld [vmem:[%s6509_s25 + $0x18] sm:$0xff]  }
 0x936   : > { %v3531_v6 = vpack.c.bf16 %v3530_v5, %v3530_v5 }
 0x938   : > { %5222 = vmatmul.mubr.msk.bf16.vlgmr.msra.gmra.mxu1 %vm2539_vm3, %v3531_v6 }
 0x939   : > { %5235 = vmatprep.mubr.msk.bf16.mxu1 %vm5530_vm4, %v5529_v45  ;;  %5234 = vmatpush3.bf16.xpose.msra.mxu1 %v3847_v30 }
 0x93a   : > { %5245 = vmatprep.subr.bf16.mxu1 %v5529_v45 }
 0x9f8   : > { %v3592_v10 = vpop.f32.mrf.mxu1 }
 0x9f9   : > { %v3593_v13 = vadd.f32 %v4949_v40, %v3592_v10  ;;  %v3949_v40 = vsel %vm2836_vm5, %v5425_v55, 0 }
 0x9fa   : > { %v5223_v14 = vpop.f32.mrf.mxu1 }
 0x9fb   : > { %v3602_v18 = vmul.f32 %v3601_v9, %v3593_v13  ;;  %v4000_v9 = vsel %vm2836_vm5, %v5426_v3, 0  ;;  %v5427_v3 = vld [vmem:[%s6510_s0] sm:$0xff]  }
 0x9fc   : > { %v3595_v16 = vpop.f32.mrf.mxu1 }
 0x9fd   : > { %v6253_v19 = vadd.f32 %v3602_v18, %v6074_v2 }
 0x9fe   : > { %v5224_v20 = vpop.f32.mrf.mxu1 }
 0x9ff   : > { %v3604_v21 = vpack.c.bf16 %v6253_v19, %v6253_v19 }
 0xa01   : > { %5230 = vmatmul.mubr.msk.bf16.vlgmr.msra.gmra.mxu0 %vm2539_vm3, %v3604_v21 }
 0xa02   : > { %5241 = vmatprep.mubr.msk.bf16.mxu0 %vm5530_vm4, %v5529_v45  ;;  %5240 = vmatpush3.bf16.xpose.msra.mxu0 %v3898_v31 }
 0xa03   : > { %5251 = vmatprep.subr.bf16.mxu0 %v5529_v45 }
 0xac1   : > { %v3665_v24 = vpop.f32.mrf.mxu0 }
 0xac2   : > { %v3666_v26 = vadd.f32 %v4953_v22, %v3665_v24 }
 0xac3   : > { %v5231_v37 = vpop.f32.mrf.mxu0 }
 0xac4   : > { %v3671_v28 = vmul.f32 0.35355338, %v3666_v26 }
 0xac5   : > { %v3668_v15 = vpop.f32.mrf.mxu0 }
 0xac6   : > { %3692 = vrot.lane.b32.xlu0 %v3671_v28, %s5533_s27  ;;  %3689 = vrot.lane.b32.xlu1 %v3671_v28, %s5532_s26  ;;  %s6513_s27 = sld [smem:[#allocation15_spill]] }
 0xac7   : > { %v5232_v2 = vpop.f32.mrf.mxu0 }
 0xaca   : > { %3695 = vrot.lane.b32.xlu1 %v3671_v28, %s5531_s3 }
 0xb38   : > { %v3693_v32 = vpop.permute.xlu0 %3692  ;;  %v3690_v33 = vpop.permute.xlu1 %3689 }
 0xb39   : > { %v3698_v36 = vcombine.low %v3671_v28, %v3693_v32  ;;  %v3699_v39 = vcombine.high %v3671_v28, %v3693_v32 }
 0xb3b   : > { %v3706_v41 = vrot.slane %v3698_v36, %v6125_v48  ;;  %v3713_v42 = vrot.slane %v3699_v39, %v6125_v48 }
 0xb3c   : > { %v3696_v1 = vpop.permute.xlu1 %3695 }
 0xb3d   : > { %v3714_v34 = vcombine.low %v3690_v33, %v3696_v1  ;;  %v3715_v38 = vcombine.high %v3690_v33, %v3696_v1 }
 0xb3f   : > { %v3722_v43 = vrot.slane %v3714_v34, %v6125_v48  ;;  %v3729_v46 = vrot.slane %v3715_v38, %v6125_v48 }
 0xb41   : > { %v3730_v17 = vcombine.low %v3706_v41, %v3722_v43  ;;  %v3731_v35 = vcombine.high %v3706_v41, %v3722_v43  ;;  %v3746_v47 = vcombine.low %v3713_v42, %v3729_v46  ;;  %v3747_v49 = vcombine.high %v3713_v42, %v3729_v46 }
 0xb43   : > { %v3738_v50 = vrot.slane %v3730_v17, %v6128_v25  ;;  %v3745_v51 = vrot.slane %v3731_v35, %v6128_v25  ;;  %v3754_v52 = vrot.slane %v3746_v47, %v6128_v25  ;;  %v3761_v53 = vrot.slane %v3747_v49, %v6128_v25 }
 0xb45   : > { %v3766_v54 = vcombine.low %v3738_v50, %v3745_v51  ;;  %v4957_v57 = vcombine.high %v3738_v50, %v3745_v51  ;;  %v3782_v58 = vcombine.low %v3754_v52, %v3761_v53  ;;  %v4958_v59 = vcombine.high %v3754_v52, %v3761_v53 }
 0xb47   : > { %v3773_v60 = vrot.slane %v3766_v54, %v6125_v48  ;;  %v3781_v44 = vrot.slane %v4957_v57, %v6125_v48  ;;  %v3789_v61 = vrot.slane %v3782_v58, %v6125_v48  ;;  %v3797_v62 = vrot.slane %v4958_v59, %v6125_v48 }
 0xb49   : > { %v3798_v63 = vcombine.low %v3773_v60, %v3781_v44  ;;  %v3814_v56 = vcombine.low %v3789_v61, %v3797_v62  ;;  %v3799_v4 = vcombine.high %v3773_v60, %v3781_v44  ;;  %v3815_v5 = vcombine.high %v3789_v61, %v3797_v62 }
 0xb4b   : > { %v3806_v6 = vrot.slane %v3798_v63, %v6128_v25  ;;  %v3822_v23 = vrot.slane %v3814_v56, %v6128_v25  ;;  %v3813_v14 = vrot.slane %v3799_v4, %v6128_v25  ;;  %v3829_v18 = vrot.slane %v3815_v5, %v6128_v25  ;;  %v5428_v4 = vld [vmem:[%s6511_s22 + $0x8] sm:$0xff]  }
 0xb4d   : > { %v3830_v7 = vcombine.low %v3806_v6, %v3822_v23  ;;  %v3831_v8 = vcombine.high %v3806_v6, %v3822_v23  ;;  %v3832_v16 = vcombine.low %v3813_v14, %v3829_v18  ;;  %v3833_v20 = vcombine.high %v3813_v14, %v3829_v18  ;;  %v5430_v18 = vld [vmem:[%s6511_s22 + $0x18] sm:$0xff]  }
 0xb4f   : > { %v3834_v10 = vpack.c.bf16 %v3830_v7, %v3830_v7  ;;  %v3835_v13 = vpack.c.bf16 %v3831_v8, %v3831_v8  ;;  %v3836_v21 = vpack.c.bf16 %v3832_v16, %v3832_v16  ;;  %v3837_v22 = vpack.c.bf16 %v3833_v20, %v3833_v20 }
 0xb51   : > { %5236 = vmatmul.mubr.msk.bf16.vlgmr.msra.gmra.mxu1 %vm2836_vm5, %v3834_v10  ;;  %5242 = vmatmul.mubr.msk.bf16.vlgmr.msra.gmra.mxu0 %vm2836_vm5, %v3835_v13  ;;  %v5429_v13 = vld [vmem:[%s6511_s22 + $0x10] sm:$0xff]  }
 0xb52   : > { %5246 = vmatpush3.bf16.xpose.msra.mxu1 %v3949_v40  ;;  %5252 = vmatpush3.bf16.xpose.msra.mxu0 %v4000_v9 }
 0xb53   : > { %5247 = vmatprep.mubr.msk.bf16.mxu1 %vm5530_vm4, %v5529_v45  ;;  %5253 = vmatprep.mubr.msk.bf16.mxu0 %vm5530_vm4, %v5529_v45 }
 0xb54   : > { %5257 = vmatprep.subr.bf16.mxu1 %v5529_v45  ;;  %5263 = vmatprep.subr.bf16.mxu0 %v5529_v45 }
 0xb59   : > { %5248 = vmatmul.mubr.msk.bf16.vlgmr.msra.gmra.mxu1 %vm2836_vm5, %v3836_v21  ;;  %5254 = vmatmul.mubr.msk.bf16.vlgmr.msra.gmra.mxu0 %vm2836_vm5, %v3837_v22 }
 0xb5a   : > { %5259 = vmatprep.mubr.msk.bf16.mxu1 %vm5530_vm4, %v5529_v45  ;;  %5265 = vmatprep.mubr.msk.bf16.mxu0 %vm5530_vm4, %v5529_v45 }
 0xb5b   : > { %5258 = vmatpush3.bf16.msra.mxu1 %v5427_v3  ;;  %5264 = vmatpush3.bf16.msra.mxu0 %v5428_v4 }
 0xb5c   : > { %5269 = vmatprep.subr.bf16.mxu1 %v5529_v45  ;;  %5275 = vmatprep.subr.bf16.mxu0 %v5529_v45 }
 0xc11   : > { %v3883_v24 = vpop.f32.mrf.mxu1  ;;  %v3934_v26 = vpop.f32.mrf.mxu0 }
 0xc12   : > { %v4042_v37 = vsel %vm3527_vm8, %v3883_v24, -inf  ;;  %v4045_v28 = vsel %vm3527_vm8, %v3934_v26, -inf }
 0xc13   : > { %4043 = vmax.xlane.f32.xlu0 %v4042_v37  ;;  %v5237_v15 = vpop.f32.mrf.mxu1  ;;  %4046 = vmax.xlane.f32.xlu1 %v4045_v28  ;;  %v5243_v2 = vpop.f32.mrf.mxu0  ;;  %v5431_v28 = vld [vmem:[%s6512_s29 + $0x8] sm:$0xff]  }
 0xc15   : > { %v3886_v29 = vpop.f32.mrf.mxu1  ;;  %v3937_v27 = vpop.f32.mrf.mxu0 }
 0xc17   : > { %v5238_v30 = vpop.f32.mrf.mxu1  ;;  %v5244_v31 = vpop.f32.mrf.mxu0 }
 0xc19   : > { %v3985_v32 = vpop.f32.mrf.mxu1  ;;  %v4036_v33 = vpop.f32.mrf.mxu0 }
 0xc1a   : > { %v4048_v36 = vsel %vm3527_vm8, %v3985_v32, -inf  ;;  %v4051_v41 = vsel %vm3527_vm8, %v4036_v33, -inf }
 0xc1b   : > { %4049 = vmax.xlane.f32.xlu0 %v4048_v36  ;;  %v5249_v39 = vpop.f32.mrf.mxu1  ;;  %v5255_v1 = vpop.f32.mrf.mxu0 }
 0xc1d   : > { %v3988_v34 = vpop.f32.mrf.mxu1  ;;  %v4039_v38 = vpop.f32.mrf.mxu0 }
 0xc1f   : > { %v5250_v42 = vpop.f32.mrf.mxu1  ;;  %4052 = vmax.xlane.f32.xlu0 %v4051_v41  ;;  %v5256_v43 = vpop.f32.mrf.mxu0 }
 0xc9c   : > { %v4044_v46 = vpop.xlane.xlu0 %4043  ;;  %v4047_v17 = vpop.xlane.xlu1 %4046 }
 0xc9d   : > { %v4054_v35 = vsub.f32 %v3883_v24, %v4044_v46  ;;  %v4055_v47 = vsub.f32 %v3934_v26, %v4047_v17 }
 0xc9f   : > { %v4058_v49 = vmul.f32 1.442695, %v4054_v35  ;;  %v4060_v50 = vmul.f32 1.442695, %v4055_v47 }
 0xca1   : > { %5461 = vpow2.f32 %v4058_v49 }
 0xca2   : > { %5463 = vpow2.f32 %v4060_v50 }
 0xca4   : > { %v4050_v51 = vpop.xlane.xlu0 %4049 }
 0xca5   : > { %v4056_v52 = vsub.f32 %v3985_v32, %v4050_v51 }
 0xca7   : > { %v4062_v53 = vmul.f32 1.442695, %v4056_v52 }
 0xca8   : > { %v4053_v54 = vpop.xlane.xlu0 %4052 }
 0xca9   : > { %5465 = vpow2.f32 %v4062_v53  ;;  %v4057_v57 = vsub.f32 %v4036_v33, %v4053_v54 }
 0xcab   : > { %v4064_v58 = vmul.f32 1.442695, %v4057_v57 }
 0xcad   : > { %5467 = vpow2.f32 %v4064_v58 }
 0xcae   : > { %v5462_v59 = vpop.eup %5461 }
 0xcaf   : > { %v5464_v60 = vpop.eup %5463  ;;  %v4066_v44 = vsel %vm3527_vm8, %v5462_v59, 0.0 }
 0xcb0   : > { %4067 = vadd.xlane.f32.xlu1 %v4066_v44  ;;  %v4069_v61 = vsel %vm3527_vm8, %v5464_v60, 0.0 }
 0xcb1   : > { %4070 = vadd.xlane.f32.xlu0 %v4069_v61 }
 0xcb6   : > { %v5466_v62 = vpop.eup %5465 }
 0xcb7   : > { %v4072_v63 = vsel %vm3527_vm8, %v5466_v62, 0.0 }
 0xcb8   : > { %4073 = vadd.xlane.f32.xlu1 %v4072_v63 }
 0xcba   : > { %v5468_v56 = vpop.eup %5467 }
 0xcbb   : > { %v4075_v55 = vsel %vm3527_vm8, %v5468_v56, 0.0 }
 0xcbc   : > { %4076 = vadd.xlane.f32.xlu0 %v4075_v55 }
 0xd39   : > { %v4068_v5 = vpop.xlane.xlu1 %4067 }
 0xd3a   : > { %5469 = vrcp.f32 %v4068_v5  ;;  %v4071_v6 = vpop.xlane.xlu0 %4070 }
 0xd3b   : > { %5471 = vrcp.f32 %v4071_v6 }
 0xd41   : > { %v4074_v23 = vpop.xlane.xlu1 %4073 }
 0xd42   : > { %5473 = vrcp.f32 %v4074_v23 }
 0xd45   : > { %v4077_v7 = vpop.xlane.xlu0 %4076 }
 0xd46   : > { %5475 = vrcp.f32 %v4077_v7 }
 0xd47   : > { %v5470_v8 = vpop.eup %5469 }
 0xd48   : > { %v5472_v40 = vpop.eup %5471  ;;  %v4082_v9 = vmul.f32 %v5470_v8, %v5462_v59  ;;  %v5432_v59 = vld [vmem:[%s6512_s29] sm:$0xff]  }
 0xd49   : > { %v4083_v10 = vmul.f32 %v5472_v40, %v5464_v60 }
 0xd4a   : > { %v4086_v14 = vpack.c.bf16 %v4082_v9, %v4082_v9 }
 0xd4b   : > { %v4087_v16 = vpack.c.bf16 %v4083_v10, %v4083_v10 }
 0xd4c   : > { %5260 = vmatmul.mubr.msk.bf16.vlgmr.msra.gmra.mxu1 %vm3527_vm8, %v4086_v14 }
 0xd4d   : > { %5266 = vmatmul.mubr.msk.bf16.vlgmr.msra.gmra.mxu0 %vm3527_vm8, %v4087_v16  ;;  %5270 = vmatpush3.bf16.msra.mxu1 %v5429_v13 }
 0xd4e   : > { %5276 = vmatpush3.bf16.msra.mxu0 %v5430_v18  ;;  %5271 = vmatprep.mubr.msk.bf16.mxu1 %vm5530_vm4, %v5529_v45 }
 0xd4f   : > { %v5474_v20 = vpop.eup %5473  ;;  %5277 = vmatprep.mubr.msk.bf16.mxu0 %vm5530_vm4, %v5529_v45  ;;  %5281 = vmatprep.subr.bf16.mxu1 %v5529_v45 }
 0xd50   : > { %v4084_v21 = vmul.f32 %v5474_v20, %v5466_v62  ;;  %5289 = vmatprep.subr.bf16.mxu0 %v5529_v45 }
 0xd52   : > { %v4088_v22 = vpack.c.bf16 %v4084_v21, %v4084_v21 }
 0xd53   : > { %v5476_v24 = vpop.eup %5475 }
 0xd54   : > { %5272 = vmatmul.mubr.msk.bf16.vlgmr.msra.gmra.mxu1 %vm3527_vm8, %v4088_v22  ;;  %v4085_v26 = vmul.f32 %v5476_v24, %v5468_v56 }
 0xd55   : > { %5285 = vmatprep.mubr.msk.bf16.mxu1 %vm5530_vm4, %v5529_v45  ;;  %5282 = vmatpush3.bf16.msra.mxu1 %v5431_v28 }
 0xd56   : > { %v4089_v37 = vpack.c.bf16 %v4085_v26, %v4085_v26  ;;  %5283 = vmatprep.subr.bf16.mxu1 %v5529_v45 }
 0xd58   : > { %5278 = vmatmul.mubr.msk.bf16.vlgmr.msra.gmra.mxu0 %vm3527_vm8, %v4089_v37 }
 0xd59   : > { %5293 = vmatprep.mubr.msk.bf16.mxu0 %vm5530_vm4, %v5529_v45  ;;  %5284 = vmatpush3.bf16.msra.mxu1 %v5432_v59  ;;  %v5437_v59 = vld [vmem:[%s6516_s2 + $0x28] sm:$0xff]  }
 0xd5a   : > { %5297 = vmatprep.subr.bf16.mxu1 %v5529_v45 }
 0xe0c   : > { %v4133_v15 = vpop.f32.mrf.mxu1 }
 0xe0d   : > { %v4182_v2 = vpop.f32.mrf.mxu0 }
 0xe0e   : > { %v5261_v29 = vpop.f32.mrf.mxu1 }
 0xe0f   : > { %v5267_v27 = vpop.f32.mrf.mxu0 }
 0xe10   : > { %v4136_v30 = vpop.f32.mrf.mxu1 }
 0xe11   : > { %v4185_v31 = vpop.f32.mrf.mxu0 }
 0xe12   : > { %v5262_v32 = vpop.f32.mrf.mxu1 }
 0xe13   : > { %v5268_v33 = vpop.f32.mrf.mxu0 }
 0xe14   : > { %v4231_v36 = vpop.f32.mrf.mxu1 }
 0xe15   : > { %v4286_v1 = vcombine.low %v4133_v15, %v4231_v36  ;;  %v4287_v34 = vcombine.high %v4133_v15, %v4231_v36 }
 0xe16   : > { %v5273_v39 = vpop.f32.mrf.mxu1 }
 0xe17   : > { %v4294_v35 = vrot.slane %v4286_v1, %v6125_v48  ;;  %v4301_v47 = vrot.slane %v4287_v34, %v6125_v48 }
 0xe18   : > { %v4234_v38 = vpop.f32.mrf.mxu1  ;;  %v4280_v41 = vpop.f32.mrf.mxu0 }
 0xe19   : > { %v4302_v42 = vcombine.low %v4182_v2, %v4280_v41  ;;  %v4303_v43 = vcombine.high %v4182_v2, %v4280_v41  ;;  %v4977_v2 = vld [vmem:[%s6513_s27] ss:$0 sm:$0xff] }
 0xe1a   : > { %v5274_v46 = vpop.f32.mrf.mxu1  ;;  %v5279_v17 = vpop.f32.mrf.mxu0 }
 0xe1b   : > { %v4310_v49 = vrot.slane %v4302_v42, %v6125_v48  ;;  %v4317_v50 = vrot.slane %v4303_v43, %v6125_v48  ;;  %v5433_v42 = vld [vmem:[%s6514_s13 + $0x8] sm:$0xff]  }
 0xe1c   : > { %v4283_v51 = vpop.f32.mrf.mxu0  ;;  %5290 = vmatpush3.bf16.msra.mxu0 %v5433_v42 }
 0xe1d   : > { %v4318_v52 = vcombine.low %v4294_v35, %v4310_v49  ;;  %v4319_v53 = vcombine.high %v4294_v35, %v4310_v49  ;;  %v4334_v54 = vcombine.low %v4301_v47, %v4317_v50  ;;  %v4335_v57 = vcombine.high %v4301_v47, %v4317_v50  ;;  %5291 = vmatprep.subr.bf16.mxu0 %v5529_v45 }
 0xe1e   : > { %v5280_v58 = vpop.f32.mrf.mxu0  ;;  %v4520_v35 = vsub.s32 4, %v6094_v11  ;;  %v4525_v47 = vsub.s32 3, %v6094_v11 }
 0xe1f   : > { %v4326_v60 = vrot.slane %v4318_v52, %v6128_v25  ;;  %v4333_v44 = vrot.slane %v4319_v53, %v6128_v25  ;;  %v4342_v61 = vrot.slane %v4334_v54, %v6128_v25  ;;  %v4349_v62 = vrot.slane %v4335_v57, %v6128_v25  ;;  %v5435_v58 = vld [vmem:[%s6515_s1 + $0x38] sm:$0xff]  }
 0xe20   : > { %v4521_v49 = vrot.slane %v6097_v12, %v4520_v35  ;;  %v4526_v52 = vrot.slane %v5679_v0, %v4525_v47  ;;  %v5436_v12 = vld [vmem:[%s6516_s2 + $0x30] sm:$0xff]  }
 0xe21   : > { %v4354_v63 = vcombine.low %v4326_v60, %v4333_v44  ;;  %v4975_v56 = vcombine.high %v4326_v60, %v4333_v44  ;;  %v4370_v55 = vcombine.low %v4342_v61, %v4349_v62  ;;  %v4976_v3 = vcombine.high %v4342_v61, %v4349_v62  ;;  %v5438_v60 = vld [vmem:[%s6516_s2 + $0x20] sm:$0xff]   ;;  %v5439_v44 = vld [vmem:[%s6516_s2 + $0x18] sm:$0xff]   ;;  %v5440_v61 = vld [vmem:[%s6516_s2 + $0x10] sm:$0xff]  }
 0xe22   : > { %v5441_v62 = vld [vmem:[%s6516_s2 + $0x8] sm:$0xff]  }
 0xe23   : > { %v4361_v4 = vrot.slane %v4354_v63, %v6125_v48  ;;  %v4369_v5 = vrot.slane %v4975_v56, %v6125_v48  ;;  %v4377_v6 = vrot.slane %v4370_v55, %v6125_v48  ;;  %v4385_v23 = vrot.slane %v4976_v3, %v6125_v48  ;;  %v5442_v63 = vld [vmem:[%s6516_s2] sm:$0xff]  }
 0xe24   : > { %v4981_v56 = vld [vmem:[%s6517_s14] ss:$0 sm:$0xff] }
 0xe25   : > { %v4387_v7 = vcombine.high %v4361_v4, %v4369_v5  ;;  %v4403_v8 = vcombine.high %v4377_v6, %v4385_v23  ;;  %v4386_v40 = vcombine.low %v4361_v4, %v4369_v5  ;;  %v4402_v9 = vcombine.low %v4377_v6, %v4385_v23 }
 0xe27   : > { %v4401_v10 = vrot.slane %v4387_v7, %v6128_v25  ;;  %v4417_v13 = vrot.slane %v4403_v8, %v6128_v25  ;;  %v4394_v14 = vrot.slane %v4386_v40, %v6128_v25  ;;  %v4410_v18 = vrot.slane %v4402_v9, %v6128_v25 }
 0xe29   : > { %v4420_v16 = vcombine.low %v4401_v10, %v4417_v13  ;;  %v4419_v20 = vcombine.high %v4394_v14, %v4410_v18  ;;  %v4418_v21 = vcombine.low %v4394_v14, %v4410_v18  ;;  %v4421_v48 = vcombine.high %v4401_v10, %v4417_v13 }
 0xe2b   : > { %4427 = vrot.lane.b32.xlu0 %v4420_v16, %s5536_s15  ;;  %4423 = vrot.lane.b32.xlu1 %v4419_v20, %s5537_s16  ;;  %v4718_v16 = vsub.s32 5, %v6094_v11  ;;  %v4985_v20 = vld [vmem:[%s6518_s28] ss:$0 sm:$0xff] }
 0xe2f   : > { %4431 = vrot.lane.b32.xlu1 %v4421_v48, %s5538_s17 }
 0xe9d   : > { %v4424_v22 = vpop.permute.xlu1 %4423  ;;  %v4428_v24 = vpop.permute.xlu0 %4427 }
 0xe9e   : > { %v4434_v26 = vsel %vm2836_vm5, %v4418_v21, %v4424_v22  ;;  %v4719_v21 = vrot.slane %v5679_v0, %v4718_v16 }
 0xe9f   : > { %v4435_v28 = vsel %vm3527_vm8, %v4434_v26, %v4428_v24 }
 0xea1   : > { %v4432_v37 = vpop.permute.xlu1 %4431 }
 0xea2   : > { %v4436_v15 = vsel %vm3529_vm9, %v4435_v28, %v4432_v37 }
 0xea3   : > { %v4437_v25 = vpack.c.bf16 %v4436_v15, %v4436_v15 }
 0xea5   : > { %5286 = vmatmul.mubr.msk.bf16.vlgmr.msra.gmra.mxu1 %vm2539_vm3, %v4437_v25 }
 0xea6   : > { %5313 = vmatprep.mubr.msk.bf16.mxu1 %vm5530_vm4, %v5529_v45  ;;  %5298 = vmatpush3.bf16.msra.mxu1 %v5435_v58 }
 0xea7   : > { %5299 = vmatprep.subr.bf16.mxu1 %v5529_v45 }
 0xeaa   : > { %5300 = vmatpush3.bf16.msra.mxu1 %v5436_v12 }
 0xeab   : > { %5301 = vmatprep.subr.bf16.mxu1 %v5529_v45 }
 0xeae   : > { %5302 = vmatpush3.bf16.msra.mxu1 %v5437_v59 }
 0xeaf   : > { %5303 = vmatprep.subr.bf16.mxu1 %v5529_v45 }
 0xeb2   : > { %5304 = vmatpush3.bf16.msra.mxu1 %v5438_v60 }
 0xeb3   : > { %5305 = vmatprep.subr.bf16.mxu1 %v5529_v45 }
 0xeb6   : > { %5306 = vmatpush3.bf16.msra.mxu1 %v5439_v44 }
 0xeb7   : > { %5307 = vmatprep.subr.bf16.mxu1 %v5529_v45 }
 0xeba   : > { %5308 = vmatpush3.bf16.msra.mxu1 %v5440_v61 }
 0xebb   : > { %5309 = vmatprep.subr.bf16.mxu1 %v5529_v45 }
 0xebe   : > { %5310 = vmatpush3.bf16.msra.mxu1 %v5441_v62 }
 0xebf   : > { %5311 = vmatprep.subr.bf16.mxu1 %v5529_v45 }
 0xec2   : > { %5312 = vmatpush3.bf16.msra.mxu1 %v5442_v63 }
 0xf65   : > { %v4498_v29 = vpop.f32.mrf.mxu1 }
 0xf66   : > { %v4499_v27 = vadd.f32 %v4977_v2, %v4498_v29 }
 0xf67   : > { %v5287_v30 = vpop.f32.mrf.mxu1 }
 0xf68   : > { %v6387_v31 = vadd.f32 %v4499_v27, %v6253_v19  ;;  %v5434_v19 = vld [vmem:[%s6514_s13] sm:$0xff]  }
 0xf69   : > { %v4501_v32 = vpop.f32.mrf.mxu1  ;;  %5292 = vmatpush3.bf16.msra.mxu0 %v5434_v19 }
 0xf6a   : > { %v4505_v33 = vsel %vm2539_vm3, %v6387_v31, 0.0 }
 0xf6b   : > { %4506 = vadd.xlane.f32.xlu1 %v4505_v33  ;;  %v5288_v36 = vpop.f32.mrf.mxu1 }
 0xff4   : > { %v4507_v39 = vpop.xlane.xlu1 %4506 }
 0xff5   : > { %v4508_v1 = vmul.f32 0.03125, %v4507_v39 }
 0xff7   : > { %v4509_v34 = vsub.f32 %v6387_v31, %v4508_v1 }
 0xff9   : > { %v4510_v38 = vmul.f32 %v4509_v34, %v4509_v34 }
 0xffb   : > { %v4511_v41 = vsel %vm2539_vm3, %v4510_v38, 0.0 }
 0xffc   : > { %4512 = vadd.xlane.f32.xlu0 %v4511_v41 }
0x1085   : > { %v4513_v43 = vpop.xlane.xlu0 %4512 }
0x1086   : > { %v4514_v46 = vmul.f32 0.03125, %v4513_v43 }
0x1088   : > { %v4515_v17 = vadd.f32 1e-06, %v4514_v46 }
0x108a   : > { %5477 = vrsqrt.f32 %v4515_v17 }
0x1097   : > { %v5478_v50 = vpop.eup %5477 }
0x1098   : > { %v4517_v51 = vmul.f32 %v5478_v50, %v4509_v34 }
0x109a   : > { %v4522_v53 = vmul.f32 %v4521_v49, %v4517_v51 }
0x109c   : > { %v4527_v54 = vadd.f32 %v4526_v52, %v4522_v53 }
0x109e   : > { %v4528_v57 = vpack.c.bf16 %v4527_v54, %v4527_v54 }
0x10a0   : > { %5294 = vmatmul.mubr.msk.bf16.vlgmr.msra.gmra.mxu0 %vm2539_vm3, %v4528_v57 }
0x1160   : > { %v4589_v55 = vpop.f32.mrf.mxu0 }
0x1161   : > { %v4590_v3 = vadd.f32 %v4981_v56, %v4589_v55 }
0x1162   : > { %v5295_v4 = vpop.f32.mrf.mxu0 }
0x1163   : > { %v4596_v5 = vmul.f32 0.044715, %v4590_v3  ;;  %v4595_v13 = vmul.f32 0.5, %v4590_v3 }
0x1164   : > { %v4592_v6 = vpop.f32.mrf.mxu0 }
0x1165   : > { %v4597_v23 = vmul.f32 %v4596_v5, %v4590_v3 }
0x1166   : > { %v5296_v7 = vpop.f32.mrf.mxu0 }
0x1167   : > { %v4598_v8 = vmul.f32 %v4597_v23, %v4590_v3 }
0x1169   : > { %v4599_v40 = vadd.f32 %v4598_v8, %v4590_v3 }
0x116b   : > { %v4600_v9 = vmul.f32 0.7978846, %v4599_v40 }
0x116d   : > { %5479 = vtanh.f32 %v4600_v9 }
0x117a   : > { %v5480_v10 = vpop.eup %5479 }
0x117b   : > { %v4602_v45 = vadd.f32 1.0, %v5480_v10 }
0x117d   : > { %v4603_v14 = vmul.f32 %v4602_v45, %v4595_v13 }
0x117f   : > { %v4604_v18 = vpack.c.bf16 %v4603_v14, %v4603_v14 }
0x1181   : > { %5314 = vmatmul.mubr.bf16.vlgmr.msra.gmra.mxu1 %v4604_v18 }
0x1241   : > { %v4710_v48 = vpop.f32.mrf.mxu1 }
0x1242   : > { %v4711_v22 = vadd.f32 %v4985_v20, %v4710_v48 }
0x1243   : > { %v5315_v24 = vpop.f32.mrf.mxu1 }
0x1244   : > { %v4720_v26 = vmul.f32 %v4719_v21, %v4711_v22 }
0x1245   : > { %v4713_v37 = vpop.f32.mrf.mxu1 }
0x1246   : > { %v4721_v28 = vadd.f32 %v4720_v26, %v6387_v31 }
0x1247   : > { %v5316_v15 = vpop.f32.mrf.mxu1 }
0x1248   : > { %4722 = vst.msk [vmem:[%s5689_s30] sm:$0xff] %vm2539_vm3, %v4721_v28 }
0x1249 PF: > { %s6519_s3 = sld [smem:[#allocation6_spill]] }
0x124a   : > { %s6520_s0 = sld [smem:[#allocation4_spill]] }
0x124b   : > { %s6521_s30 = sld [smem:[#allocation5_spill]] }
0x124c   : > { %s6522_s20 = sld [smem:[#allocation7_spill]] }
0x124d   : > { %s6523_s21 = sld [smem:[#allocation8_spill]] }
0x124f   : > { %s29_s1 = sadd.s32 1, %s6519_s3  }
0x1250   : > { %p26_p8 = scmp.ge.s32.totalorder %s29_s1, 12  }
0x1252   :  { %28 = sbr.rel (!%p26_p8) target bundleno = 12 (0xc), region = 136 }

</bundles_post_ra>
